<compile_context>
chip_gen: v7x
topology: tpu7x:2x2x1
jax: 0.10.0
libtpu: 0.0.40
codegen_flags: <defaults>
</compile_context>

<pallas_src>
import jax
import jax.numpy as jnp
from jax.experimental import pallas as pl
from jax.experimental.pallas import tpu as pltpu

INPUT_SIZE = 10
HIDDEN_SIZE = 2
NUM_LAYERS = 2
NUM_GATES = 4                     # PyTorch order: i, f, g, o
GATE_PERM = (0, 1, 3, 2)          # repack to kernel order: i, f, o, g


def _lstm2_kernel(x_ref,          # (S*B, I)  time-major inputs, flattened
                  w_ref,          # (I + 2 + 3H, 4H) packed parameter slab
                  out_ref):       # (S + 2*L, B*H): y rows, then h_n, then c_n
    I = INPUT_SIZE
    H = HIDDEN_SIZE
    G4 = NUM_GATES * H
    S = out_ref.shape[0] - 2 * NUM_LAYERS
    B = x_ref.shape[0] // S

    # ---- loop-invariant loads / hoisted work (runs once) -------------------
    w0 = w_ref[0:I, :]                              # (I, 4H)  layer-0 W_ih^T
    b0 = w_ref[I:I + 1, :]                          # (1, 4H)  fused bias l0
    wh0 = w_ref[I + 1:I + 1 + H, :]                 # (H, 4H)  layer-0 W_hh^T
    wi1 = w_ref[I + 1 + H:I + 1 + 2 * H, :]         # (H, 4H)  layer-1 W_ih^T
    wh1 = w_ref[I + 1 + 2 * H:I + 1 + 3 * H, :]     # (H, 4H)  layer-1 W_hh^T
    b1 = w_ref[I + 1 + 3 * H:I + 2 + 3 * H, :]      # (1, 4H)  fused bias l1

    # Layer-0 input projection for ALL timesteps: one small MXU matmul
    # (M=S*B, K=I, N=4H) with the bias folded in, off the serial recurrence.
    xw0 = jnp.dot(x_ref[...], w0, preferred_element_type=jnp.float32) + b0

    # Lane mask: first 3H lanes (i,f,o) -> sigmoid, last H lanes (g) -> tanh.
    lane = jax.lax.broadcasted_iota(jnp.int32, (1, G4), 1)
    is_sig = lane < 3 * H

    def lstm_cell(pre, c_prev):
        # sigmoid(x) = 0.5*tanh(0.5*x) + 0.5  -> a SINGLE EUP tanh covers all
        # four gates at once (gates are lane-contiguous, ordered [i,f,o,g]).
        t = jnp.tanh(jnp.where(is_sig, 0.5 * pre, pre))
        act = jnp.where(is_sig, 0.5 * t + 0.5, t)
        i = act[:, 0:H]
        f = act[:, H:2 * H]
        o = act[:, 2 * H:3 * H]
        g = act[:, 3 * H:4 * H]
        c = f * c_prev + i * g
        h = o * jnp.tanh(c)
        return h, c

    def rec(pre, h, w):
        # (B,1) x (1,4H) broadcast-FMAs: one FMA per hidden element updates
        # all four gates (pure VPU work, no MXU latency on the serial chain).
        for m in range(H):
            pre = pre + h[:, m:m + 1] * w[m:m + 1, :]
        return pre

    zeros = jnp.zeros((B, H), jnp.float32)
    h0, c0, h1, c1 = zeros, zeros, zeros, zeros
    ys = []

    # S is small and static: full Python unroll.  After the repacking the live
    # set is a handful of vregs (3 weight vregs + xw0 + cell state), well under
    # the 64-vreg budget, so no spills.
    for t in range(S):
        pre0 = rec(xw0[t * B:(t + 1) * B, :], h0, wh0)
        h0, c0 = lstm_cell(pre0, c0)

        pre1 = rec(rec(b1, h0, wi1), h1, wh1)
        h1, c1 = lstm_cell(pre1, c1)
        ys.append(h1)

    # ---- single lane-dense output slab: one store, one output DMA ----------
    def as_row(m):  # (B, H) -> (1, B*H), C-order flatten
        return jnp.concatenate([m[b:b + 1, :] for b in range(B)], axis=1)

    rows = [as_row(v) for v in ys + [h0, h1, c0, c1]]
    out_ref[...] = jnp.concatenate(rows, axis=0).astype(out_ref.dtype)


def another_lstm_forward(x, params):
    """x: (S, B, INPUT_SIZE) float32.  Returns (y, (h_n, c_n)) like nn.LSTM."""
    S, B, I = x.shape
    H = HIDDEN_SIZE
    f32 = jnp.float32
    perm = jnp.array(GATE_PERM)

    def gate_cols(w):
        # (4H, D) PyTorch gate-major rows [i,f,g,o] -> (D, 4H) with gate
        # columns reordered to [i, f, o, g].
        return jnp.transpose(
            w.reshape(NUM_GATES, H, -1)[perm].reshape(NUM_GATES * H, -1)
        ).astype(f32)

    def gate_bias(b_ih, b_hh):
        b = (b_ih + b_hh).reshape(NUM_GATES, H)[perm]
        return b.reshape(1, NUM_GATES * H).astype(f32)

    # One packed parameter slab -> one input DMA for all weights/biases.
    slab = jnp.concatenate([
        gate_cols(params["w_ih_l0"]),                        # (I, 4H)
        gate_bias(params["b_ih_l0"], params["b_hh_l0"]),     # (1, 4H)
        gate_cols(params["w_hh_l0"]),                         # (H, 4H)
        gate_cols(params["w_ih_l1"]),                         # (H, 4H)
        gate_cols(params["w_hh_l1"]),                         # (H, 4H)
        gate_bias(params["b_ih_l1"], params["b_hh_l1"]),      # (1, 4H)
    ], axis=0)                                                # (I+2+3H, 4H)

    x2d = x.reshape(S * B, I).astype(f32)

    # Footprint is a few KiB -> everything VMEM-resident, no grid needed
    # (grid steps would only add ~0.35 us/step of pipeline overhead).
    vmem = pl.BlockSpec(memory_space=pltpu.MemorySpace.VMEM)
    packed = pl.pallas_call(
        _lstm2_kernel,
        out_shape=jax.ShapeDtypeStruct((S + 2 * NUM_LAYERS, B * H), f32),
        in_specs=[vmem, vmem],
        out_specs=vmem,
    )(x2d, slab)

    y = packed[:S].reshape(S, B, H)
    h_n = packed[S:S + NUM_LAYERS].reshape(NUM_LAYERS, B, H)
    c_n = packed[S + NUM_LAYERS:].reshape(NUM_LAYERS, B, H)
    return y, (h_n, c_n)


def _init_params(key):
    """Deterministic init matching PyTorch LSTM parameter shapes."""
    k = 1.0 / jnp.sqrt(jnp.float32(HIDDEN_SIZE))
    keys = jax.random.split(key, 8)
    u = lambda kk, shape: jax.random.uniform(kk, shape, jnp.float32, -k, k)
    return {
        "w_ih_l0": u(keys[0], (4 * HIDDEN_SIZE, INPUT_SIZE)),
        "w_hh_l0": u(keys[1], (4 * HIDDEN_SIZE, HIDDEN_SIZE)),
        "b_ih_l0": u(keys[2], (4 * HIDDEN_SIZE,)),
        "b_hh_l0": u(keys[3], (4 * HIDDEN_SIZE,)),
        "w_ih_l1": u(keys[4], (4 * HIDDEN_SIZE, HIDDEN_SIZE)),
        "w_hh_l1": u(keys[5], (4 * HIDDEN_SIZE, HIDDEN_SIZE)),
        "b_ih_l1": u(keys[6], (4 * HIDDEN_SIZE,)),
        "b_hh_l1": u(keys[7], (4 * HIDDEN_SIZE,)),
    }


def _reference_lstm(x, params):
    """Pure-JAX reference in PyTorch gate order (i,f,g,o) for correctness."""
    S, B, _ = x.shape
    H = HIDDEN_SIZE

    def cell(x_t, h, c, w_ih, w_hh, b_ih, b_hh):
        g = x_t @ w_ih.T + h @ w_hh.T + b_ih + b_hh
        i = jax.nn.sigmoid(g[:, 0 * H:1 * H])
        f = jax.nn.sigmoid(g[:, 1 * H:2 * H])
        gg = jnp.tanh(g[:, 2 * H:3 * H])
        o = jax.nn.sigmoid(g[:, 3 * H:4 * H])
        c = f * c + i * gg
        h = o * jnp.tanh(c)
        return h, c

    h0 = c0 = h1 = c1 = jnp.zeros((B, H), jnp.float32)
    ys = []
    for t in range(S):
        h0, c0 = cell(x[t], h0, c0, params["w_ih_l0"], params["w_hh_l0"],
                      params["b_ih_l0"], params["b_hh_l0"])
        h1, c1 = cell(h0, h1, c1, params["w_ih_l1"], params["w_hh_l1"],
                      params["b_ih_l1"], params["b_hh_l1"])
        ys.append(h1)
    return jnp.stack(ys, 0), (jnp.stack([h0, h1], 0), jnp.stack([c0, c1], 0))


if __name__ == "__main__":
    key = jax.random.PRNGKey(0)
    k_params, k_x = jax.random.split(key)

    params = _init_params(k_params)
    S, B = 8, 2                                  # seq=8, batch=2, input=10
    x = jax.random.normal(k_x, (S, B, INPUT_SIZE), jnp.float32)

    y, (h_n, c_n) = another_lstm_forward(x, params)
    jax.block_until_ready((y, h_n, c_n))

    y_ref, (h_ref, c_ref) = _reference_lstm(x, params)
    assert jnp.allclose(y, y_ref, atol=1e-5), "output mismatch"
    assert jnp.allclose(h_n, h_ref, atol=1e-5), "h_n mismatch"
    assert jnp.allclose(c_n, c_ref, atol=1e-5), "c_n mismatch"

    print("KERNEL_OK")
</pallas_src>

<mosaic_0001>
module attributes {stable_mosaic.version = 11 : i64} {
  func.func @_lstm2_kernel(%arg0: memref<16x10xf32, #tpu.memory_space<vmem>>, %arg1: memref<18x8xf32, #tpu.memory_space<vmem>>, %arg2: memref<12x4xf32, #tpu.memory_space<vmem>>) attributes {dimension_semantics = [], scalar_prefetch = 0 : i64, scratch_operands = 0 : i64, tpu.core_type = #tpu.core_type<tc>} {
    %c0 = arith.constant 0 : index
    %c0_0 = arith.constant 0 : index
    %0 = vector.load %arg1[%c0, %c0_0] : memref<18x8xf32, #tpu.memory_space<vmem>>, vector<10x8xf32>
    %c10 = arith.constant 10 : index
    %c0_1 = arith.constant 0 : index
    %1 = vector.load %arg1[%c10, %c0_1] : memref<18x8xf32, #tpu.memory_space<vmem>>, vector<1x8xf32>
    %c11 = arith.constant 11 : index
    %c0_2 = arith.constant 0 : index
    %2 = vector.load %arg1[%c11, %c0_2] : memref<18x8xf32, #tpu.memory_space<vmem>>, vector<2x8xf32>
    %c13 = arith.constant 13 : index
    %c0_3 = arith.constant 0 : index
    %3 = vector.load %arg1[%c13, %c0_3] : memref<18x8xf32, #tpu.memory_space<vmem>>, vector<2x8xf32>
    %c15 = arith.constant 15 : index
    %c0_4 = arith.constant 0 : index
    %4 = vector.load %arg1[%c15, %c0_4] : memref<18x8xf32, #tpu.memory_space<vmem>>, vector<2x8xf32>
    %c17 = arith.constant 17 : index
    %c0_5 = arith.constant 0 : index
    %5 = vector.load %arg1[%c17, %c0_5] : memref<18x8xf32, #tpu.memory_space<vmem>>, vector<1x8xf32>
    %c0_6 = arith.constant 0 : index
    %c0_7 = arith.constant 0 : index
    %6 = vector.load %arg0[%c0_6, %c0_7] : memref<16x10xf32, #tpu.memory_space<vmem>>, vector<16x10xf32>
    %cst = arith.constant dense<0.000000e+00> : vector<16x8xf32>
    %7 = tpu.matmul %6, %0, %cst {dimension_numbers = #tpu.dot_dimension_numbers<[1], [0], [0], [1], [0, 0, 1, 1], [], []>} : vector<16x10xf32>, vector<10x8xf32>, vector<16x8xf32> -> vector<16x8xf32>
    %8 = vector.broadcast %1 : vector<1x8xf32> to vector<16x8xf32>
    %9 = arith.addf %7, %8 : vector<16x8xf32>
    %10 = tpu.iota {dimensions = array<i32: 1>} : vector<1x8xi32>
    %c6_i32 = arith.constant 6 : i32
    %11 = vector.broadcast %c6_i32 : i32 to vector<1x8xi32>
    %12 = arith.cmpi slt, %10, %11 : vector<1x8xi32>
    %cst_8 = arith.constant 0.000000e+00 : f32
    %13 = vector.broadcast %cst_8 : f32 to vector<2x2xf32>
    %14 = vector.extract_strided_slice %9 {offsets = [0, 0], sizes = [2, 8], strides = [1, 1]} : vector<16x8xf32> to vector<2x8xf32>
    %15 = vector.extract_strided_slice %13 {offsets = [0, 0], sizes = [2, 1], strides = [1, 1]} : vector<2x2xf32> to vector<2x1xf32>
    %16 = vector.extract_strided_slice %2 {offsets = [0, 0], sizes = [1, 8], strides = [1, 1]} : vector<2x8xf32> to vector<1x8xf32>
    %17 = vector.broadcast %15 : vector<2x1xf32> to vector<2x8xf32>
    %18 = vector.broadcast %16 : vector<1x8xf32> to vector<2x8xf32>
    %19 = arith.mulf %17, %18 : vector<2x8xf32>
    %20 = arith.addf %14, %19 : vector<2x8xf32>
    %21 = vector.extract_strided_slice %13 {offsets = [0, 1], sizes = [2, 1], strides = [1, 1]} : vector<2x2xf32> to vector<2x1xf32>
    %22 = vector.extract_strided_slice %2 {offsets = [1, 0], sizes = [1, 8], strides = [1, 1]} : vector<2x8xf32> to vector<1x8xf32>
    %23 = vector.broadcast %21 : vector<2x1xf32> to vector<2x8xf32>
    %24 = vector.broadcast %22 : vector<1x8xf32> to vector<2x8xf32>
    %25 = arith.mulf %23, %24 : vector<2x8xf32>
    %26 = arith.addf %20, %25 : vector<2x8xf32>
    %cst_9 = arith.constant 5.000000e-01 : f32
    %27 = vector.broadcast %cst_9 : f32 to vector<2x8xf32>
    %28 = arith.mulf %27, %26 : vector<2x8xf32>
    %29 = vector.shape_cast %12 : vector<1x8xi1> to vector<1x8xi1>
    %30 = vector.broadcast %29 : vector<1x8xi1> to vector<2x8xi1>
    %31 = arith.select %30, %28, %26 : vector<2x8xi1>, vector<2x8xf32>
    %32 = math.tanh %31 : vector<2x8xf32>
    %cst_10 = arith.constant 5.000000e-01 : f32
    %33 = vector.broadcast %cst_10 : f32 to vector<2x8xf32>
    %34 = arith.mulf %33, %32 : vector<2x8xf32>
    %cst_11 = arith.constant 5.000000e-01 : f32
    %35 = vector.broadcast %cst_11 : f32 to vector<2x8xf32>
    %36 = arith.addf %34, %35 : vector<2x8xf32>
    %37 = vector.shape_cast %12 : vector<1x8xi1> to vector<1x8xi1>
    %38 = vector.broadcast %37 : vector<1x8xi1> to vector<2x8xi1>
    %39 = arith.select %38, %36, %32 : vector<2x8xi1>, vector<2x8xf32>
    %40 = vector.extract_strided_slice %39 {offsets = [0, 0], sizes = [2, 2], strides = [1, 1]} : vector<2x8xf32> to vector<2x2xf32>
    %41 = vector.extract_strided_slice %39 {offsets = [0, 2], sizes = [2, 2], strides = [1, 1]} : vector<2x8xf32> to vector<2x2xf32>
    %42 = vector.extract_strided_slice %39 {offsets = [0, 4], sizes = [2, 2], strides = [1, 1]} : vector<2x8xf32> to vector<2x2xf32>
    %43 = vector.extract_strided_slice %39 {offsets = [0, 6], sizes = [2, 2], strides = [1, 1]} : vector<2x8xf32> to vector<2x2xf32>
    %44 = arith.mulf %41, %13 : vector<2x2xf32>
    %45 = arith.mulf %40, %43 : vector<2x2xf32>
    %46 = arith.addf %44, %45 : vector<2x2xf32>
    %47 = math.tanh %46 : vector<2x2xf32>
    %48 = arith.mulf %42, %47 : vector<2x2xf32>
    %49 = vector.extract_strided_slice %48 {offsets = [0, 0], sizes = [2, 1], strides = [1, 1]} : vector<2x2xf32> to vector<2x1xf32>
    %50 = vector.extract_strided_slice %3 {offsets = [0, 0], sizes = [1, 8], strides = [1, 1]} : vector<2x8xf32> to vector<1x8xf32>
    %51 = vector.broadcast %49 : vector<2x1xf32> to vector<2x8xf32>
    %52 = vector.broadcast %50 : vector<1x8xf32> to vector<2x8xf32>
    %53 = arith.mulf %51, %52 : vector<2x8xf32>
    %54 = vector.broadcast %5 : vector<1x8xf32> to vector<2x8xf32>
    %55 = arith.addf %54, %53 : vector<2x8xf32>
    %56 = vector.extract_strided_slice %48 {offsets = [0, 1], sizes = [2, 1], strides = [1, 1]} : vector<2x2xf32> to vector<2x1xf32>
    %57 = vector.extract_strided_slice %3 {offsets = [1, 0], sizes = [1, 8], strides = [1, 1]} : vector<2x8xf32> to vector<1x8xf32>
    %58 = vector.broadcast %56 : vector<2x1xf32> to vector<2x8xf32>
    %59 = vector.broadcast %57 : vector<1x8xf32> to vector<2x8xf32>
    %60 = arith.mulf %58, %59 : vector<2x8xf32>
    %61 = arith.addf %55, %60 : vector<2x8xf32>
    %62 = vector.extract_strided_slice %13 {offsets = [0, 0], sizes = [2, 1], strides = [1, 1]} : vector<2x2xf32> to vector<2x1xf32>
    %63 = vector.extract_strided_slice %4 {offsets = [0, 0], sizes = [1, 8], strides = [1, 1]} : vector<2x8xf32> to vector<1x8xf32>
    %64 = vector.broadcast %62 : vector<2x1xf32> to vector<2x8xf32>
    %65 = vector.broadcast %63 : vector<1x8xf32> to vector<2x8xf32>
    %66 = arith.mulf %64, %65 : vector<2x8xf32>
    %67 = arith.addf %61, %66 : vector<2x8xf32>
    %68 = vector.extract_strided_slice %13 {offsets = [0, 1], sizes = [2, 1], strides = [1, 1]} : vector<2x2xf32> to vector<2x1xf32>
    %69 = vector.extract_strided_slice %4 {offsets = [1, 0], sizes = [1, 8], strides = [1, 1]} : vector<2x8xf32> to vector<1x8xf32>
    %70 = vector.broadcast %68 : vector<2x1xf32> to vector<2x8xf32>
    %71 = vector.broadcast %69 : vector<1x8xf32> to vector<2x8xf32>
    %72 = arith.mulf %70, %71 : vector<2x8xf32>
    %73 = arith.addf %67, %72 : vector<2x8xf32>
    %cst_12 = arith.constant 5.000000e-01 : f32
    %74 = vector.broadcast %cst_12 : f32 to vector<2x8xf32>
    %75 = arith.mulf %74, %73 : vector<2x8xf32>
    %76 = vector.shape_cast %12 : vector<1x8xi1> to vector<1x8xi1>
    %77 = vector.broadcast %76 : vector<1x8xi1> to vector<2x8xi1>
    %78 = arith.select %77, %75, %73 : vector<2x8xi1>, vector<2x8xf32>
    %79 = math.tanh %78 : vector<2x8xf32>
    %cst_13 = arith.constant 5.000000e-01 : f32
    %80 = vector.broadcast %cst_13 : f32 to vector<2x8xf32>
    %81 = arith.mulf %80, %79 : vector<2x8xf32>
    %cst_14 = arith.constant 5.000000e-01 : f32
    %82 = vector.broadcast %cst_14 : f32 to vector<2x8xf32>
    %83 = arith.addf %81, %82 : vector<2x8xf32>
    %84 = vector.shape_cast %12 : vector<1x8xi1> to vector<1x8xi1>
    %85 = vector.broadcast %84 : vector<1x8xi1> to vector<2x8xi1>
    %86 = arith.select %85, %83, %79 : vector<2x8xi1>, vector<2x8xf32>
    %87 = vector.extract_strided_slice %86 {offsets = [0, 0], sizes = [2, 2], strides = [1, 1]} : vector<2x8xf32> to vector<2x2xf32>
    %88 = vector.extract_strided_slice %86 {offsets = [0, 2], sizes = [2, 2], strides = [1, 1]} : vector<2x8xf32> to vector<2x2xf32>
    %89 = vector.extract_strided_slice %86 {offsets = [0, 4], sizes = [2, 2], strides = [1, 1]} : vector<2x8xf32> to vector<2x2xf32>
    %90 = vector.extract_strided_slice %86 {offsets = [0, 6], sizes = [2, 2], strides = [1, 1]} : vector<2x8xf32> to vector<2x2xf32>
    %91 = arith.mulf %88, %13 : vector<2x2xf32>
    %92 = arith.mulf %87, %90 : vector<2x2xf32>
    %93 = arith.addf %91, %92 : vector<2x2xf32>
    %94 = math.tanh %93 : vector<2x2xf32>
    %95 = arith.mulf %89, %94 : vector<2x2xf32>
    %96 = vector.extract_strided_slice %9 {offsets = [2, 0], sizes = [2, 8], strides = [1, 1]} : vector<16x8xf32> to vector<2x8xf32>
    %97 = vector.extract_strided_slice %48 {offsets = [0, 0], sizes = [2, 1], strides = [1, 1]} : vector<2x2xf32> to vector<2x1xf32>
    %98 = vector.extract_strided_slice %2 {offsets = [0, 0], sizes = [1, 8], strides = [1, 1]} : vector<2x8xf32> to vector<1x8xf32>
    %99 = vector.broadcast %97 : vector<2x1xf32> to vector<2x8xf32>
    %100 = vector.broadcast %98 : vector<1x8xf32> to vector<2x8xf32>
    %101 = arith.mulf %99, %100 : vector<2x8xf32>
    %102 = arith.addf %96, %101 : vector<2x8xf32>
    %103 = vector.extract_strided_slice %48 {offsets = [0, 1], sizes = [2, 1], strides = [1, 1]} : vector<2x2xf32> to vector<2x1xf32>
    %104 = vector.extract_strided_slice %2 {offsets = [1, 0], sizes = [1, 8], strides = [1, 1]} : vector<2x8xf32> to vector<1x8xf32>
    %105 = vector.broadcast %103 : vector<2x1xf32> to vector<2x8xf32>
    %106 = vector.broadcast %104 : vector<1x8xf32> to vector<2x8xf32>
    %107 = arith.mulf %105, %106 : vector<2x8xf32>
    %108 = arith.addf %102, %107 : vector<2x8xf32>
    %cst_15 = arith.constant 5.000000e-01 : f32
    %109 = vector.broadcast %cst_15 : f32 to vector<2x8xf32>
    %110 = arith.mulf %109, %108 : vector<2x8xf32>
    %111 = vector.shape_cast %12 : vector<1x8xi1> to vector<1x8xi1>
    %112 = vector.broadcast %111 : vector<1x8xi1> to vector<2x8xi1>
    %113 = arith.select %112, %110, %108 : vector<2x8xi1>, vector<2x8xf32>
    %114 = math.tanh %113 : vector<2x8xf32>
    %cst_16 = arith.constant 5.000000e-01 : f32
    %115 = vector.broadcast %cst_16 : f32 to vector<2x8xf32>
    %116 = arith.mulf %115, %114 : vector<2x8xf32>
    %cst_17 = arith.constant 5.000000e-01 : f32
    %117 = vector.broadcast %cst_17 : f32 to vector<2x8xf32>
    %118 = arith.addf %116, %117 : vector<2x8xf32>
    %119 = vector.shape_cast %12 : vector<1x8xi1> to vector<1x8xi1>
    %120 = vector.broadcast %119 : vector<1x8xi1> to vector<2x8xi1>
    %121 = arith.select %120, %118, %114 : vector<2x8xi1>, vector<2x8xf32>
    %122 = vector.extract_strided_slice %121 {offsets = [0, 0], sizes = [2, 2], strides = [1, 1]} : vector<2x8xf32> to vector<2x2xf32>
    %123 = vector.extract_strided_slice %121 {offsets = [0, 2], sizes = [2, 2], strides = [1, 1]} : vector<2x8xf32> to vector<2x2xf32>
    %124 = vector.extract_strided_slice %121 {offsets = [0, 4], sizes = [2, 2], strides = [1, 1]} : vector<2x8xf32> to vector<2x2xf32>
    %125 = vector.extract_strided_slice %121 {offsets = [0, 6], sizes = [2, 2], strides = [1, 1]} : vector<2x8xf32> to vector<2x2xf32>
    %126 = arith.mulf %123, %46 : vector<2x2xf32>
    %127 = arith.mulf %122, %125 : vector<2x2xf32>
    %128 = arith.addf %126, %127 : vector<2x2xf32>
    %129 = math.tanh %128 : vector<2x2xf32>
    %130 = arith.mulf %124, %129 : vector<2x2xf32>
    %131 = vector.extract_strided_slice %130 {offsets = [0, 0], sizes = [2, 1], strides = [1, 1]} : vector<2x2xf32> to vector<2x1xf32>
    %132 = vector.extract_strided_slice %3 {offsets = [0, 0], sizes = [1, 8], strides = [1, 1]} : vector<2x8xf32> to vector<1x8xf32>
    %133 = vector.broadcast %131 : vector<2x1xf32> to vector<2x8xf32>
    %134 = vector.broadcast %132 : vector<1x8xf32> to vector<2x8xf32>
    %135 = arith.mulf %133, %134 : vector<2x8xf32>
    %136 = vector.broadcast %5 : vector<1x8xf32> to vector<2x8xf32>
    %137 = arith.addf %136, %135 : vector<2x8xf32>
    %138 = vector.extract_strided_slice %130 {offsets = [0, 1], sizes = [2, 1], strides = [1, 1]} : vector<2x2xf32> to vector<2x1xf32>
    %139 = vector.extract_strided_slice %3 {offsets = [1, 0], sizes = [1, 8], strides = [1, 1]} : vector<2x8xf32> to vector<1x8xf32>
    %140 = vector.broadcast %138 : vector<2x1xf32> to vector<2x8xf32>
    %141 = vector.broadcast %139 : vector<1x8xf32> to vector<2x8xf32>
    %142 = arith.mulf %140, %141 : vector<2x8xf32>
    %143 = arith.addf %137, %142 : vector<2x8xf32>
    %144 = vector.extract_strided_slice %95 {offsets = [0, 0], sizes = [2, 1], strides = [1, 1]} : vector<2x2xf32> to vector<2x1xf32>
    %145 = vector.extract_strided_slice %4 {offsets = [0, 0], sizes = [1, 8], strides = [1, 1]} : vector<2x8xf32> to vector<1x8xf32>
    %146 = vector.broadcast %144 : vector<2x1xf32> to vector<2x8xf32>
    %147 = vector.broadcast %145 : vector<1x8xf32> to vector<2x8xf32>
    %148 = arith.mulf %146, %147 : vector<2x8xf32>
    %149 = arith.addf %143, %148 : vector<2x8xf32>
    %150 = vector.extract_strided_slice %95 {offsets = [0, 1], sizes = [2, 1], strides = [1, 1]} : vector<2x2xf32> to vector<2x1xf32>
    %151 = vector.extract_strided_slice %4 {offsets = [1, 0], sizes = [1, 8], strides = [1, 1]} : vector<2x8xf32> to vector<1x8xf32>
    %152 = vector.broadcast %150 : vector<2x1xf32> to vector<2x8xf32>
    %153 = vector.broadcast %151 : vector<1x8xf32> to vector<2x8xf32>
    %154 = arith.mulf %152, %153 : vector<2x8xf32>
    %155 = arith.addf %149, %154 : vector<2x8xf32>
    %cst_18 = arith.constant 5.000000e-01 : f32
    %156 = vector.broadcast %cst_18 : f32 to vector<2x8xf32>
    %157 = arith.mulf %156, %155 : vector<2x8xf32>
    %158 = vector.shape_cast %12 : vector<1x8xi1> to vector<1x8xi1>
    %159 = vector.broadcast %158 : vector<1x8xi1> to vector<2x8xi1>
    %160 = arith.select %159, %157, %155 : vector<2x8xi1>, vector<2x8xf32>
    %161 = math.tanh %160 : vector<2x8xf32>
    %cst_19 = arith.constant 5.000000e-01 : f32
    %162 = vector.broadcast %cst_19 : f32 to vector<2x8xf32>
    %163 = arith.mulf %162, %161 : vector<2x8xf32>
    %cst_20 = arith.constant 5.000000e-01 : f32
    %164 = vector.broadcast %cst_20 : f32 to vector<2x8xf32>
    %165 = arith.addf %163, %164 : vector<2x8xf32>
    %166 = vector.shape_cast %12 : vector<1x8xi1> to vector<1x8xi1>
    %167 = vector.broadcast %166 : vector<1x8xi1> to vector<2x8xi1>
    %168 = arith.select %167, %165, %161 : vector<2x8xi1>, vector<2x8xf32>
    %169 = vector.extract_strided_slice %168 {offsets = [0, 0], sizes = [2, 2], strides = [1, 1]} : vector<2x8xf32> to vector<2x2xf32>
    %170 = vector.extract_strided_slice %168 {offsets = [0, 2], sizes = [2, 2], strides = [1, 1]} : vector<2x8xf32> to vector<2x2xf32>
    %171 = vector.extract_strided_slice %168 {offsets = [0, 4], sizes = [2, 2], strides = [1, 1]} : vector<2x8xf32> to vector<2x2xf32>
    %172 = vector.extract_strided_slice %168 {offsets = [0, 6], sizes = [2, 2], strides = [1, 1]} : vector<2x8xf32> to vector<2x2xf32>
    %173 = arith.mulf %170, %93 : vector<2x2xf32>
    %174 = arith.mulf %169, %172 : vector<2x2xf32>
    %175 = arith.addf %173, %174 : vector<2x2xf32>
    %176 = math.tanh %175 : vector<2x2xf32>
    %177 = arith.mulf %171, %176 : vector<2x2xf32>
    %178 = vector.extract_strided_slice %9 {offsets = [4, 0], sizes = [2, 8], strides = [1, 1]} : vector<16x8xf32> to vector<2x8xf32>
    %179 = vector.extract_strided_slice %130 {offsets = [0, 0], sizes = [2, 1], strides = [1, 1]} : vector<2x2xf32> to vector<2x1xf32>
    %180 = vector.extract_strided_slice %2 {offsets = [0, 0], sizes = [1, 8], strides = [1, 1]} : vector<2x8xf32> to vector<1x8xf32>
    %181 = vector.broadcast %179 : vector<2x1xf32> to vector<2x8xf32>
    %182 = vector.broadcast %180 : vector<1x8xf32> to vector<2x8xf32>
    %183 = arith.mulf %181, %182 : vector<2x8xf32>
    %184 = arith.addf %178, %183 : vector<2x8xf32>
    %185 = vector.extract_strided_slice %130 {offsets = [0, 1], sizes = [2, 1], strides = [1, 1]} : vector<2x2xf32> to vector<2x1xf32>
    %186 = vector.extract_strided_slice %2 {offsets = [1, 0], sizes = [1, 8], strides = [1, 1]} : vector<2x8xf32> to vector<1x8xf32>
    %187 = vector.broadcast %185 : vector<2x1xf32> to vector<2x8xf32>
    %188 = vector.broadcast %186 : vector<1x8xf32> to vector<2x8xf32>
    %189 = arith.mulf %187, %188 : vector<2x8xf32>
    %190 = arith.addf %184, %189 : vector<2x8xf32>
    %cst_21 = arith.constant 5.000000e-01 : f32
    %191 = vector.broadcast %cst_21 : f32 to vector<2x8xf32>
    %192 = arith.mulf %191, %190 : vector<2x8xf32>
    %193 = vector.shape_cast %12 : vector<1x8xi1> to vector<1x8xi1>
    %194 = vector.broadcast %193 : vector<1x8xi1> to vector<2x8xi1>
    %195 = arith.select %194, %192, %190 : vector<2x8xi1>, vector<2x8xf32>
    %196 = math.tanh %195 : vector<2x8xf32>
    %cst_22 = arith.constant 5.000000e-01 : f32
    %197 = vector.broadcast %cst_22 : f32 to vector<2x8xf32>
    %198 = arith.mulf %197, %196 : vector<2x8xf32>
    %cst_23 = arith.constant 5.000000e-01 : f32
    %199 = vector.broadcast %cst_23 : f32 to vector<2x8xf32>
    %200 = arith.addf %198, %199 : vector<2x8xf32>
    %201 = vector.shape_cast %12 : vector<1x8xi1> to vector<1x8xi1>
    %202 = vector.broadcast %201 : vector<1x8xi1> to vector<2x8xi1>
    %203 = arith.select %202, %200, %196 : vector<2x8xi1>, vector<2x8xf32>
    %204 = vector.extract_strided_slice %203 {offsets = [0, 0], sizes = [2, 2], strides = [1, 1]} : vector<2x8xf32> to vector<2x2xf32>
    %205 = vector.extract_strided_slice %203 {offsets = [0, 2], sizes = [2, 2], strides = [1, 1]} : vector<2x8xf32> to vector<2x2xf32>
    %206 = vector.extract_strided_slice %203 {offsets = [0, 4], sizes = [2, 2], strides = [1, 1]} : vector<2x8xf32> to vector<2x2xf32>
    %207 = vector.extract_strided_slice %203 {offsets = [0, 6], sizes = [2, 2], strides = [1, 1]} : vector<2x8xf32> to vector<2x2xf32>
    %208 = arith.mulf %205, %128 : vector<2x2xf32>
    %209 = arith.mulf %204, %207 : vector<2x2xf32>
    %210 = arith.addf %208, %209 : vector<2x2xf32>
    %211 = math.tanh %210 : vector<2x2xf32>
    %212 = arith.mulf %206, %211 : vector<2x2xf32>
    %213 = vector.extract_strided_slice %212 {offsets = [0, 0], sizes = [2, 1], strides = [1, 1]} : vector<2x2xf32> to vector<2x1xf32>
    %214 = vector.extract_strided_slice %3 {offsets = [0, 0], sizes = [1, 8], strides = [1, 1]} : vector<2x8xf32> to vector<1x8xf32>
    %215 = vector.broadcast %213 : vector<2x1xf32> to vector<2x8xf32>
    %216 = vector.broadcast %214 : vector<1x8xf32> to vector<2x8xf32>
    %217 = arith.mulf %215, %216 : vector<2x8xf32>
    %218 = vector.broadcast %5 : vector<1x8xf32> to vector<2x8xf32>
    %219 = arith.addf %218, %217 : vector<2x8xf32>
    %220 = vector.extract_strided_slice %212 {offsets = [0, 1], sizes = [2, 1], strides = [1, 1]} : vector<2x2xf32> to vector<2x1xf32>
    %221 = vector.extract_strided_slice %3 {offsets = [1, 0], sizes = [1, 8], strides = [1, 1]} : vector<2x8xf32> to vector<1x8xf32>
    %222 = vector.broadcast %220 : vector<2x1xf32> to vector<2x8xf32>
    %223 = vector.broadcast %221 : vector<1x8xf32> to vector<2x8xf32>
    %224 = arith.mulf %222, %223 : vector<2x8xf32>
    %225 = arith.addf %219, %224 : vector<2x8xf32>
    %226 = vector.extract_strided_slice %177 {offsets = [0, 0], sizes = [2, 1], strides = [1, 1]} : vector<2x2xf32> to vector<2x1xf32>
    %227 = vector.extract_strided_slice %4 {offsets = [0, 0], sizes = [1, 8], strides = [1, 1]} : vector<2x8xf32> to vector<1x8xf32>
    %228 = vector.broadcast %226 : vector<2x1xf32> to vector<2x8xf32>
    %229 = vector.broadcast %227 : vector<1x8xf32> to vector<2x8xf32>
    %230 = arith.mulf %228, %229 : vector<2x8xf32>
    %231 = arith.addf %225, %230 : vector<2x8xf32>
    %232 = vector.extract_strided_slice %177 {offsets = [0, 1], sizes = [2, 1], strides = [1, 1]} : vector<2x2xf32> to vector<2x1xf32>
    %233 = vector.extract_strided_slice %4 {offsets = [1, 0], sizes = [1, 8], strides = [1, 1]} : vector<2x8xf32> to vector<1x8xf32>
    %234 = vector.broadcast %232 : vector<2x1xf32> to vector<2x8xf32>
    %235 = vector.broadcast %233 : vector<1x8xf32> to vector<2x8xf32>
    %236 = arith.mulf %234, %235 : vector<2x8xf32>
    %237 = arith.addf %231, %236 : vector<2x8xf32>
    %cst_24 = arith.constant 5.000000e-01 : f32
    %238 = vector.broadcast %cst_24 : f32 to vector<2x8xf32>
    %239 = arith.mulf %238, %237 : vector<2x8xf32>
    %240 = vector.shape_cast %12 : vector<1x8xi1> to vector<1x8xi1>
    %241 = vector.broadcast %240 : vector<1x8xi1> to vector<2x8xi1>
    %242 = arith.select %241, %239, %237 : vector<2x8xi1>, vector<2x8xf32>
    %243 = math.tanh %242 : vector<2x8xf32>
    %cst_25 = arith.constant 5.000000e-01 : f32
    %244 = vector.broadcast %cst_25 : f32 to vector<2x8xf32>
    %245 = arith.mulf %244, %243 : vector<2x8xf32>
    %cst_26 = arith.constant 5.000000e-01 : f32
    %246 = vector.broadcast %cst_26 : f32 to vector<2x8xf32>
    %247 = arith.addf %245, %246 : vector<2x8xf32>
    %248 = vector.shape_cast %12 : vector<1x8xi1> to vector<1x8xi1>
    %249 = vector.broadcast %248 : vector<1x8xi1> to vector<2x8xi1>
    %250 = arith.select %249, %247, %243 : vector<2x8xi1>, vector<2x8xf32>
    %251 = vector.extract_strided_slice %250 {offsets = [0, 0], sizes = [2, 2], strides = [1, 1]} : vector<2x8xf32> to vector<2x2xf32>
    %252 = vector.extract_strided_slice %250 {offsets = [0, 2], sizes = [2, 2], strides = [1, 1]} : vector<2x8xf32> to vector<2x2xf32>
    %253 = vector.extract_strided_slice %250 {offsets = [0, 4], sizes = [2, 2], strides = [1, 1]} : vector<2x8xf32> to vector<2x2xf32>
    %254 = vector.extract_strided_slice %250 {offsets = [0, 6], sizes = [2, 2], strides = [1, 1]} : vector<2x8xf32> to vector<2x2xf32>
    %255 = arith.mulf %252, %175 : vector<2x2xf32>
    %256 = arith.mulf %251, %254 : vector<2x2xf32>
    %257 = arith.addf %255, %256 : vector<2x2xf32>
    %258 = math.tanh %257 : vector<2x2xf32>
    %259 = arith.mulf %253, %258 : vector<2x2xf32>
    %260 = vector.extract_strided_slice %9 {offsets = [6, 0], sizes = [2, 8], strides = [1, 1]} : vector<16x8xf32> to vector<2x8xf32>
    %261 = vector.extract_strided_slice %212 {offsets = [0, 0], sizes = [2, 1], strides = [1, 1]} : vector<2x2xf32> to vector<2x1xf32>
    %262 = vector.extract_strided_slice %2 {offsets = [0, 0], sizes = [1, 8], strides = [1, 1]} : vector<2x8xf32> to vector<1x8xf32>
    %263 = vector.broadcast %261 : vector<2x1xf32> to vector<2x8xf32>
    %264 = vector.broadcast %262 : vector<1x8xf32> to vector<2x8xf32>
    %265 = arith.mulf %263, %264 : vector<2x8xf32>
    %266 = arith.addf %260, %265 : vector<2x8xf32>
    %267 = vector.extract_strided_slice %212 {offsets = [0, 1], sizes = [2, 1], strides = [1, 1]} : vector<2x2xf32> to vector<2x1xf32>
    %268 = vector.extract_strided_slice %2 {offsets = [1, 0], sizes = [1, 8], strides = [1, 1]} : vector<2x8xf32> to vector<1x8xf32>
    %269 = vector.broadcast %267 : vector<2x1xf32> to vector<2x8xf32>
    %270 = vector.broadcast %268 : vector<1x8xf32> to vector<2x8xf32>
    %271 = arith.mulf %269, %270 : vector<2x8xf32>
    %272 = arith.addf %266, %271 : vector<2x8xf32>
    %cst_27 = arith.constant 5.000000e-01 : f32
    %273 = vector.broadcast %cst_27 : f32 to vector<2x8xf32>
    %274 = arith.mulf %273, %272 : vector<2x8xf32>
    %275 = vector.shape_cast %12 : vector<1x8xi1> to vector<1x8xi1>
    %276 = vector.broadcast %275 : vector<1x8xi1> to vector<2x8xi1>
    %277 = arith.select %276, %274, %272 : vector<2x8xi1>, vector<2x8xf32>
    %278 = math.tanh %277 : vector<2x8xf32>
    %cst_28 = arith.constant 5.000000e-01 : f32
    %279 = vector.broadcast %cst_28 : f32 to vector<2x8xf32>
    %280 = arith.mulf %279, %278 : vector<2x8xf32>
    %cst_29 = arith.constant 5.000000e-01 : f32
    %281 = vector.broadcast %cst_29 : f32 to vector<2x8xf32>
    %282 = arith.addf %280, %281 : vector<2x8xf32>
    %283 = vector.shape_cast %12 : vector<1x8xi1> to vector<1x8xi1>
    %284 = vector.broadcast %283 : vector<1x8xi1> to vector<2x8xi1>
    %285 = arith.select %284, %282, %278 : vector<2x8xi1>, vector<2x8xf32>
    %286 = vector.extract_strided_slice %285 {offsets = [0, 0], sizes = [2, 2], strides = [1, 1]} : vector<2x8xf32> to vector<2x2xf32>
    %287 = vector.extract_strided_slice %285 {offsets = [0, 2], sizes = [2, 2], strides = [1, 1]} : vector<2x8xf32> to vector<2x2xf32>
    %288 = vector.extract_strided_slice %285 {offsets = [0, 4], sizes = [2, 2], strides = [1, 1]} : vector<2x8xf32> to vector<2x2xf32>
    %289 = vector.extract_strided_slice %285 {offsets = [0, 6], sizes = [2, 2], strides = [1, 1]} : vector<2x8xf32> to vector<2x2xf32>
    %290 = arith.mulf %287, %210 : vector<2x2xf32>
    %291 = arith.mulf %286, %289 : vector<2x2xf32>
    %292 = arith.addf %290, %291 : vector<2x2xf32>
    %293 = math.tanh %292 : vector<2x2xf32>
    %294 = arith.mulf %288, %293 : vector<2x2xf32>
    %295 = vector.extract_strided_slice %294 {offsets = [0, 0], sizes = [2, 1], strides = [1, 1]} : vector<2x2xf32> to vector<2x1xf32>
    %296 = vector.extract_strided_slice %3 {offsets = [0, 0], sizes = [1, 8], strides = [1, 1]} : vector<2x8xf32> to vector<1x8xf32>
    %297 = vector.broadcast %295 : vector<2x1xf32> to vector<2x8xf32>
    %298 = vector.broadcast %296 : vector<1x8xf32> to vector<2x8xf32>
    %299 = arith.mulf %297, %298 : vector<2x8xf32>
    %300 = vector.broadcast %5 : vector<1x8xf32> to vector<2x8xf32>
    %301 = arith.addf %300, %299 : vector<2x8xf32>
    %302 = vector.extract_strided_slice %294 {offsets = [0, 1], sizes = [2, 1], strides = [1, 1]} : vector<2x2xf32> to vector<2x1xf32>
    %303 = vector.extract_strided_slice %3 {offsets = [1, 0], sizes = [1, 8], strides = [1, 1]} : vector<2x8xf32> to vector<1x8xf32>
    %304 = vector.broadcast %302 : vector<2x1xf32> to vector<2x8xf32>
    %305 = vector.broadcast %303 : vector<1x8xf32> to vector<2x8xf32>
    %306 = arith.mulf %304, %305 : vector<2x8xf32>
    %307 = arith.addf %301, %306 : vector<2x8xf32>
    %308 = vector.extract_strided_slice %259 {offsets = [0, 0], sizes = [2, 1], strides = [1, 1]} : vector<2x2xf32> to vector<2x1xf32>
    %309 = vector.extract_strided_slice %4 {offsets = [0, 0], sizes = [1, 8], strides = [1, 1]} : vector<2x8xf32> to vector<1x8xf32>
    %310 = vector.broadcast %308 : vector<2x1xf32> to vector<2x8xf32>
    %311 = vector.broadcast %309 : vector<1x8xf32> to vector<2x8xf32>
    %312 = arith.mulf %310, %311 : vector<2x8xf32>
    %313 = arith.addf %307, %312 : vector<2x8xf32>
    %314 = vector.extract_strided_slice %259 {offsets = [0, 1], sizes = [2, 1], strides = [1, 1]} : vector<2x2xf32> to vector<2x1xf32>
    %315 = vector.extract_strided_slice %4 {offsets = [1, 0], sizes = [1, 8], strides = [1, 1]} : vector<2x8xf32> to vector<1x8xf32>
    %316 = vector.broadcast %314 : vector<2x1xf32> to vector<2x8xf32>
    %317 = vector.broadcast %315 : vector<1x8xf32> to vector<2x8xf32>
    %318 = arith.mulf %316, %317 : vector<2x8xf32>
    %319 = arith.addf %313, %318 : vector<2x8xf32>
    %cst_30 = arith.constant 5.000000e-01 : f32
    %320 = vector.broadcast %cst_30 : f32 to vector<2x8xf32>
    %321 = arith.mulf %320, %319 : vector<2x8xf32>
    %322 = vector.shape_cast %12 : vector<1x8xi1> to vector<1x8xi1>
    %323 = vector.broadcast %322 : vector<1x8xi1> to vector<2x8xi1>
    %324 = arith.select %323, %321, %319 : vector<2x8xi1>, vector<2x8xf32>
    %325 = math.tanh %324 : vector<2x8xf32>
    %cst_31 = arith.constant 5.000000e-01 : f32
    %326 = vector.broadcast %cst_31 : f32 to vector<2x8xf32>
    %327 = arith.mulf %326, %325 : vector<2x8xf32>
    %cst_32 = arith.constant 5.000000e-01 : f32
    %328 = vector.broadcast %cst_32 : f32 to vector<2x8xf32>
    %329 = arith.addf %327, %328 : vector<2x8xf32>
    %330 = vector.shape_cast %12 : vector<1x8xi1> to vector<1x8xi1>
    %331 = vector.broadcast %330 : vector<1x8xi1> to vector<2x8xi1>
    %332 = arith.select %331, %329, %325 : vector<2x8xi1>, vector<2x8xf32>
    %333 = vector.extract_strided_slice %332 {offsets = [0, 0], sizes = [2, 2], strides = [1, 1]} : vector<2x8xf32> to vector<2x2xf32>
    %334 = vector.extract_strided_slice %332 {offsets = [0, 2], sizes = [2, 2], strides = [1, 1]} : vector<2x8xf32> to vector<2x2xf32>
    %335 = vector.extract_strided_slice %332 {offsets = [0, 4], sizes = [2, 2], strides = [1, 1]} : vector<2x8xf32> to vector<2x2xf32>
    %336 = vector.extract_strided_slice %332 {offsets = [0, 6], sizes = [2, 2], strides = [1, 1]} : vector<2x8xf32> to vector<2x2xf32>
    %337 = arith.mulf %334, %257 : vector<2x2xf32>
    %338 = arith.mulf %333, %336 : vector<2x2xf32>
    %339 = arith.addf %337, %338 : vector<2x2xf32>
    %340 = math.tanh %339 : vector<2x2xf32>
    %341 = arith.mulf %335, %340 : vector<2x2xf32>
    %342 = vector.extract_strided_slice %9 {offsets = [8, 0], sizes = [2, 8], strides = [1, 1]} : vector<16x8xf32> to vector<2x8xf32>
    %343 = vector.extract_strided_slice %294 {offsets = [0, 0], sizes = [2, 1], strides = [1, 1]} : vector<2x2xf32> to vector<2x1xf32>
    %344 = vector.extract_strided_slice %2 {offsets = [0, 0], sizes = [1, 8], strides = [1, 1]} : vector<2x8xf32> to vector<1x8xf32>
    %345 = vector.broadcast %343 : vector<2x1xf32> to vector<2x8xf32>
    %346 = vector.broadcast %344 : vector<1x8xf32> to vector<2x8xf32>
    %347 = arith.mulf %345, %346 : vector<2x8xf32>
    %348 = arith.addf %342, %347 : vector<2x8xf32>
    %349 = vector.extract_strided_slice %294 {offsets = [0, 1], sizes = [2, 1], strides = [1, 1]} : vector<2x2xf32> to vector<2x1xf32>
    %350 = vector.extract_strided_slice %2 {offsets = [1, 0], sizes = [1, 8], strides = [1, 1]} : vector<2x8xf32> to vector<1x8xf32>
    %351 = vector.broadcast %349 : vector<2x1xf32> to vector<2x8xf32>
    %352 = vector.broadcast %350 : vector<1x8xf32> to vector<2x8xf32>
    %353 = arith.mulf %351, %352 : vector<2x8xf32>
    %354 = arith.addf %348, %353 : vector<2x8xf32>
    %cst_33 = arith.constant 5.000000e-01 : f32
    %355 = vector.broadcast %cst_33 : f32 to vector<2x8xf32>
    %356 = arith.mulf %355, %354 : vector<2x8xf32>
    %357 = vector.shape_cast %12 : vector<1x8xi1> to vector<1x8xi1>
    %358 = vector.broadcast %357 : vector<1x8xi1> to vector<2x8xi1>
    %359 = arith.select %358, %356, %354 : vector<2x8xi1>, vector<2x8xf32>
    %360 = math.tanh %359 : vector<2x8xf32>
    %cst_34 = arith.constant 5.000000e-01 : f32
    %361 = vector.broadcast %cst_34 : f32 to vector<2x8xf32>
    %362 = arith.mulf %361, %360 : vector<2x8xf32>
    %cst_35 = arith.constant 5.000000e-01 : f32
    %363 = vector.broadcast %cst_35 : f32 to vector<2x8xf32>
    %364 = arith.addf %362, %363 : vector<2x8xf32>
    %365 = vector.shape_cast %12 : vector<1x8xi1> to vector<1x8xi1>
    %366 = vector.broadcast %365 : vector<1x8xi1> to vector<2x8xi1>
    %367 = arith.select %366, %364, %360 : vector<2x8xi1>, vector<2x8xf32>
    %368 = vector.extract_strided_slice %367 {offsets = [0, 0], sizes = [2, 2], strides = [1, 1]} : vector<2x8xf32> to vector<2x2xf32>
    %369 = vector.extract_strided_slice %367 {offsets = [0, 2], sizes = [2, 2], strides = [1, 1]} : vector<2x8xf32> to vector<2x2xf32>
    %370 = vector.extract_strided_slice %367 {offsets = [0, 4], sizes = [2, 2], strides = [1, 1]} : vector<2x8xf32> to vector<2x2xf32>
    %371 = vector.extract_strided_slice %367 {offsets = [0, 6], sizes = [2, 2], strides = [1, 1]} : vector<2x8xf32> to vector<2x2xf32>
    %372 = arith.mulf %369, %292 : vector<2x2xf32>
    %373 = arith.mulf %368, %371 : vector<2x2xf32>
    %374 = arith.addf %372, %373 : vector<2x2xf32>
    %375 = math.tanh %374 : vector<2x2xf32>
    %376 = arith.mulf %370, %375 : vector<2x2xf32>
    %377 = vector.extract_strided_slice %376 {offsets = [0, 0], sizes = [2, 1], strides = [1, 1]} : vector<2x2xf32> to vector<2x1xf32>
    %378 = vector.extract_strided_slice %3 {offsets = [0, 0], sizes = [1, 8], strides = [1, 1]} : vector<2x8xf32> to vector<1x8xf32>
    %379 = vector.broadcast %377 : vector<2x1xf32> to vector<2x8xf32>
    %380 = vector.broadcast %378 : vector<1x8xf32> to vector<2x8xf32>
    %381 = arith.mulf %379, %380 : vector<2x8xf32>
    %382 = vector.broadcast %5 : vector<1x8xf32> to vector<2x8xf32>
    %383 = arith.addf %382, %381 : vector<2x8xf32>
    %384 = vector.extract_strided_slice %376 {offsets = [0, 1], sizes = [2, 1], strides = [1, 1]} : vector<2x2xf32> to vector<2x1xf32>
    %385 = vector.extract_strided_slice %3 {offsets = [1, 0], sizes = [1, 8], strides = [1, 1]} : vector<2x8xf32> to vector<1x8xf32>
    %386 = vector.broadcast %384 : vector<2x1xf32> to vector<2x8xf32>
    %387 = vector.broadcast %385 : vector<1x8xf32> to vector<2x8xf32>
    %388 = arith.mulf %386, %387 : vector<2x8xf32>
    %389 = arith.addf %383, %388 : vector<2x8xf32>
    %390 = vector.extract_strided_slice %341 {offsets = [0, 0], sizes = [2, 1], strides = [1, 1]} : vector<2x2xf32> to vector<2x1xf32>
    %391 = vector.extract_strided_slice %4 {offsets = [0, 0], sizes = [1, 8], strides = [1, 1]} : vector<2x8xf32> to vector<1x8xf32>
    %392 = vector.broadcast %390 : vector<2x1xf32> to vector<2x8xf32>
    %393 = vector.broadcast %391 : vector<1x8xf32> to vector<2x8xf32>
    %394 = arith.mulf %392, %393 : vector<2x8xf32>
    %395 = arith.addf %389, %394 : vector<2x8xf32>
    %396 = vector.extract_strided_slice %341 {offsets = [0, 1], sizes = [2, 1], strides = [1, 1]} : vector<2x2xf32> to vector<2x1xf32>
    %397 = vector.extract_strided_slice %4 {offsets = [1, 0], sizes = [1, 8], strides = [1, 1]} : vector<2x8xf32> to vector<1x8xf32>
    %398 = vector.broadcast %396 : vector<2x1xf32> to vector<2x8xf32>
    %399 = vector.broadcast %397 : vector<1x8xf32> to vector<2x8xf32>
    %400 = arith.mulf %398, %399 : vector<2x8xf32>
    %401 = arith.addf %395, %400 : vector<2x8xf32>
    %cst_36 = arith.constant 5.000000e-01 : f32
    %402 = vector.broadcast %cst_36 : f32 to vector<2x8xf32>
    %403 = arith.mulf %402, %401 : vector<2x8xf32>
    %404 = vector.shape_cast %12 : vector<1x8xi1> to vector<1x8xi1>
    %405 = vector.broadcast %404 : vector<1x8xi1> to vector<2x8xi1>
    %406 = arith.select %405, %403, %401 : vector<2x8xi1>, vector<2x8xf32>
    %407 = math.tanh %406 : vector<2x8xf32>
    %cst_37 = arith.constant 5.000000e-01 : f32
    %408 = vector.broadcast %cst_37 : f32 to vector<2x8xf32>
    %409 = arith.mulf %408, %407 : vector<2x8xf32>
    %cst_38 = arith.constant 5.000000e-01 : f32
    %410 = vector.broadcast %cst_38 : f32 to vector<2x8xf32>
    %411 = arith.addf %409, %410 : vector<2x8xf32>
    %412 = vector.shape_cast %12 : vector<1x8xi1> to vector<1x8xi1>
    %413 = vector.broadcast %412 : vector<1x8xi1> to vector<2x8xi1>
    %414 = arith.select %413, %411, %407 : vector<2x8xi1>, vector<2x8xf32>
    %415 = vector.extract_strided_slice %414 {offsets = [0, 0], sizes = [2, 2], strides = [1, 1]} : vector<2x8xf32> to vector<2x2xf32>
    %416 = vector.extract_strided_slice %414 {offsets = [0, 2], sizes = [2, 2], strides = [1, 1]} : vector<2x8xf32> to vector<2x2xf32>
    %417 = vector.extract_strided_slice %414 {offsets = [0, 4], sizes = [2, 2], strides = [1, 1]} : vector<2x8xf32> to vector<2x2xf32>
    %418 = vector.extract_strided_slice %414 {offsets = [0, 6], sizes = [2, 2], strides = [1, 1]} : vector<2x8xf32> to vector<2x2xf32>
    %419 = arith.mulf %416, %339 : vector<2x2xf32>
    %420 = arith.mulf %415, %418 : vector<2x2xf32>
    %421 = arith.addf %419, %420 : vector<2x2xf32>
    %422 = math.tanh %421 : vector<2x2xf32>
    %423 = arith.mulf %417, %422 : vector<2x2xf32>
    %424 = vector.extract_strided_slice %9 {offsets = [10, 0], sizes = [2, 8], strides = [1, 1]} : vector<16x8xf32> to vector<2x8xf32>
    %425 = vector.extract_strided_slice %376 {offsets = [0, 0], sizes = [2, 1], strides = [1, 1]} : vector<2x2xf32> to vector<2x1xf32>
    %426 = vector.extract_strided_slice %2 {offsets = [0, 0], sizes = [1, 8], strides = [1, 1]} : vector<2x8xf32> to vector<1x8xf32>
    %427 = vector.broadcast %425 : vector<2x1xf32> to vector<2x8xf32>
    %428 = vector.broadcast %426 : vector<1x8xf32> to vector<2x8xf32>
    %429 = arith.mulf %427, %428 : vector<2x8xf32>
    %430 = arith.addf %424, %429 : vector<2x8xf32>
    %431 = vector.extract_strided_slice %376 {offsets = [0, 1], sizes = [2, 1], strides = [1, 1]} : vector<2x2xf32> to vector<2x1xf32>
    %432 = vector.extract_strided_slice %2 {offsets = [1, 0], sizes = [1, 8], strides = [1, 1]} : vector<2x8xf32> to vector<1x8xf32>
    %433 = vector.broadcast %431 : vector<2x1xf32> to vector<2x8xf32>
    %434 = vector.broadcast %432 : vector<1x8xf32> to vector<2x8xf32>
    %435 = arith.mulf %433, %434 : vector<2x8xf32>
    %436 = arith.addf %430, %435 : vector<2x8xf32>
    %cst_39 = arith.constant 5.000000e-01 : f32
    %437 = vector.broadcast %cst_39 : f32 to vector<2x8xf32>
    %438 = arith.mulf %437, %436 : vector<2x8xf32>
    %439 = vector.shape_cast %12 : vector<1x8xi1> to vector<1x8xi1>
    %440 = vector.broadcast %439 : vector<1x8xi1> to vector<2x8xi1>
    %441 = arith.select %440, %438, %436 : vector<2x8xi1>, vector<2x8xf32>
    %442 = math.tanh %441 : vector<2x8xf32>
    %cst_40 = arith.constant 5.000000e-01 : f32
    %443 = vector.broadcast %cst_40 : f32 to vector<2x8xf32>
    %444 = arith.mulf %443, %442 : vector<2x8xf32>
    %cst_41 = arith.constant 5.000000e-01 : f32
    %445 = vector.broadcast %cst_41 : f32 to vector<2x8xf32>
    %446 = arith.addf %444, %445 : vector<2x8xf32>
    %447 = vector.shape_cast %12 : vector<1x8xi1> to vector<1x8xi1>
    %448 = vector.broadcast %447 : vector<1x8xi1> to vector<2x8xi1>
    %449 = arith.select %448, %446, %442 : vector<2x8xi1>, vector<2x8xf32>
    %450 = vector.extract_strided_slice %449 {offsets = [0, 0], sizes = [2, 2], strides = [1, 1]} : vector<2x8xf32> to vector<2x2xf32>
    %451 = vector.extract_strided_slice %449 {offsets = [0, 2], sizes = [2, 2], strides = [1, 1]} : vector<2x8xf32> to vector<2x2xf32>
    %452 = vector.extract_strided_slice %449 {offsets = [0, 4], sizes = [2, 2], strides = [1, 1]} : vector<2x8xf32> to vector<2x2xf32>
    %453 = vector.extract_strided_slice %449 {offsets = [0, 6], sizes = [2, 2], strides = [1, 1]} : vector<2x8xf32> to vector<2x2xf32>
    %454 = arith.mulf %451, %374 : vector<2x2xf32>
    %455 = arith.mulf %450, %453 : vector<2x2xf32>
    %456 = arith.addf %454, %455 : vector<2x2xf32>
    %457 = math.tanh %456 : vector<2x2xf32>
    %458 = arith.mulf %452, %457 : vector<2x2xf32>
    %459 = vector.extract_strided_slice %458 {offsets = [0, 0], sizes = [2, 1], strides = [1, 1]} : vector<2x2xf32> to vector<2x1xf32>
    %460 = vector.extract_strided_slice %3 {offsets = [0, 0], sizes = [1, 8], strides = [1, 1]} : vector<2x8xf32> to vector<1x8xf32>
    %461 = vector.broadcast %459 : vector<2x1xf32> to vector<2x8xf32>
    %462 = vector.broadcast %460 : vector<1x8xf32> to vector<2x8xf32>
    %463 = arith.mulf %461, %462 : vector<2x8xf32>
    %464 = vector.broadcast %5 : vector<1x8xf32> to vector<2x8xf32>
    %465 = arith.addf %464, %463 : vector<2x8xf32>
    %466 = vector.extract_strided_slice %458 {offsets = [0, 1], sizes = [2, 1], strides = [1, 1]} : vector<2x2xf32> to vector<2x1xf32>
    %467 = vector.extract_strided_slice %3 {offsets = [1, 0], sizes = [1, 8], strides = [1, 1]} : vector<2x8xf32> to vector<1x8xf32>
    %468 = vector.broadcast %466 : vector<2x1xf32> to vector<2x8xf32>
    %469 = vector.broadcast %467 : vector<1x8xf32> to vector<2x8xf32>
    %470 = arith.mulf %468, %469 : vector<2x8xf32>
    %471 = arith.addf %465, %470 : vector<2x8xf32>
    %472 = vector.extract_strided_slice %423 {offsets = [0, 0], sizes = [2, 1], strides = [1, 1]} : vector<2x2xf32> to vector<2x1xf32>
    %473 = vector.extract_strided_slice %4 {offsets = [0, 0], sizes = [1, 8], strides = [1, 1]} : vector<2x8xf32> to vector<1x8xf32>
    %474 = vector.broadcast %472 : vector<2x1xf32> to vector<2x8xf32>
    %475 = vector.broadcast %473 : vector<1x8xf32> to vector<2x8xf32>
    %476 = arith.mulf %474, %475 : vector<2x8xf32>
    %477 = arith.addf %471, %476 : vector<2x8xf32>
    %478 = vector.extract_strided_slice %423 {offsets = [0, 1], sizes = [2, 1], strides = [1, 1]} : vector<2x2xf32> to vector<2x1xf32>
    %479 = vector.extract_strided_slice %4 {offsets = [1, 0], sizes = [1, 8], strides = [1, 1]} : vector<2x8xf32> to vector<1x8xf32>
    %480 = vector.broadcast %478 : vector<2x1xf32> to vector<2x8xf32>
    %481 = vector.broadcast %479 : vector<1x8xf32> to vector<2x8xf32>
    %482 = arith.mulf %480, %481 : vector<2x8xf32>
    %483 = arith.addf %477, %482 : vector<2x8xf32>
    %cst_42 = arith.constant 5.000000e-01 : f32
    %484 = vector.broadcast %cst_42 : f32 to vector<2x8xf32>
    %485 = arith.mulf %484, %483 : vector<2x8xf32>
    %486 = vector.shape_cast %12 : vector<1x8xi1> to vector<1x8xi1>
    %487 = vector.broadcast %486 : vector<1x8xi1> to vector<2x8xi1>
    %488 = arith.select %487, %485, %483 : vector<2x8xi1>, vector<2x8xf32>
    %489 = math.tanh %488 : vector<2x8xf32>
    %cst_43 = arith.constant 5.000000e-01 : f32
    %490 = vector.broadcast %cst_43 : f32 to vector<2x8xf32>
    %491 = arith.mulf %490, %489 : vector<2x8xf32>
    %cst_44 = arith.constant 5.000000e-01 : f32
    %492 = vector.broadcast %cst_44 : f32 to vector<2x8xf32>
    %493 = arith.addf %491, %492 : vector<2x8xf32>
    %494 = vector.shape_cast %12 : vector<1x8xi1> to vector<1x8xi1>
    %495 = vector.broadcast %494 : vector<1x8xi1> to vector<2x8xi1>
    %496 = arith.select %495, %493, %489 : vector<2x8xi1>, vector<2x8xf32>
    %497 = vector.extract_strided_slice %496 {offsets = [0, 0], sizes = [2, 2], strides = [1, 1]} : vector<2x8xf32> to vector<2x2xf32>
    %498 = vector.extract_strided_slice %496 {offsets = [0, 2], sizes = [2, 2], strides = [1, 1]} : vector<2x8xf32> to vector<2x2xf32>
    %499 = vector.extract_strided_slice %496 {offsets = [0, 4], sizes = [2, 2], strides = [1, 1]} : vector<2x8xf32> to vector<2x2xf32>
    %500 = vector.extract_strided_slice %496 {offsets = [0, 6], sizes = [2, 2], strides = [1, 1]} : vector<2x8xf32> to vector<2x2xf32>
    %501 = arith.mulf %498, %421 : vector<2x2xf32>
    %502 = arith.mulf %497, %500 : vector<2x2xf32>
    %503 = arith.addf %501, %502 : vector<2x2xf32>
    %504 = math.tanh %503 : vector<2x2xf32>
    %505 = arith.mulf %499, %504 : vector<2x2xf32>
    %506 = vector.extract_strided_slice %9 {offsets = [12, 0], sizes = [2, 8], strides = [1, 1]} : vector<16x8xf32> to vector<2x8xf32>
    %507 = vector.extract_strided_slice %458 {offsets = [0, 0], sizes = [2, 1], strides = [1, 1]} : vector<2x2xf32> to vector<2x1xf32>
    %508 = vector.extract_strided_slice %2 {offsets = [0, 0], sizes = [1, 8], strides = [1, 1]} : vector<2x8xf32> to vector<1x8xf32>
    %509 = vector.broadcast %507 : vector<2x1xf32> to vector<2x8xf32>
    %510 = vector.broadcast %508 : vector<1x8xf32> to vector<2x8xf32>
    %511 = arith.mulf %509, %510 : vector<2x8xf32>
    %512 = arith.addf %506, %511 : vector<2x8xf32>
    %513 = vector.extract_strided_slice %458 {offsets = [0, 1], sizes = [2, 1], strides = [1, 1]} : vector<2x2xf32> to vector<2x1xf32>
    %514 = vector.extract_strided_slice %2 {offsets = [1, 0], sizes = [1, 8], strides = [1, 1]} : vector<2x8xf32> to vector<1x8xf32>
    %515 = vector.broadcast %513 : vector<2x1xf32> to vector<2x8xf32>
    %516 = vector.broadcast %514 : vector<1x8xf32> to vector<2x8xf32>
    %517 = arith.mulf %515, %516 : vector<2x8xf32>
    %518 = arith.addf %512, %517 : vector<2x8xf32>
    %cst_45 = arith.constant 5.000000e-01 : f32
    %519 = vector.broadcast %cst_45 : f32 to vector<2x8xf32>
    %520 = arith.mulf %519, %518 : vector<2x8xf32>
    %521 = vector.shape_cast %12 : vector<1x8xi1> to vector<1x8xi1>
    %522 = vector.broadcast %521 : vector<1x8xi1> to vector<2x8xi1>
    %523 = arith.select %522, %520, %518 : vector<2x8xi1>, vector<2x8xf32>
    %524 = math.tanh %523 : vector<2x8xf32>
    %cst_46 = arith.constant 5.000000e-01 : f32
    %525 = vector.broadcast %cst_46 : f32 to vector<2x8xf32>
    %526 = arith.mulf %525, %524 : vector<2x8xf32>
    %cst_47 = arith.constant 5.000000e-01 : f32
    %527 = vector.broadcast %cst_47 : f32 to vector<2x8xf32>
    %528 = arith.addf %526, %527 : vector<2x8xf32>
    %529 = vector.shape_cast %12 : vector<1x8xi1> to vector<1x8xi1>
    %530 = vector.broadcast %529 : vector<1x8xi1> to vector<2x8xi1>
    %531 = arith.select %530, %528, %524 : vector<2x8xi1>, vector<2x8xf32>
    %532 = vector.extract_strided_slice %531 {offsets = [0, 0], sizes = [2, 2], strides = [1, 1]} : vector<2x8xf32> to vector<2x2xf32>
    %533 = vector.extract_strided_slice %531 {offsets = [0, 2], sizes = [2, 2], strides = [1, 1]} : vector<2x8xf32> to vector<2x2xf32>
    %534 = vector.extract_strided_slice %531 {offsets = [0, 4], sizes = [2, 2], strides = [1, 1]} : vector<2x8xf32> to vector<2x2xf32>
    %535 = vector.extract_strided_slice %531 {offsets = [0, 6], sizes = [2, 2], strides = [1, 1]} : vector<2x8xf32> to vector<2x2xf32>
    %536 = arith.mulf %533, %456 : vector<2x2xf32>
    %537 = arith.mulf %532, %535 : vector<2x2xf32>
    %538 = arith.addf %536, %537 : vector<2x2xf32>
    %539 = math.tanh %538 : vector<2x2xf32>
    %540 = arith.mulf %534, %539 : vector<2x2xf32>
    %541 = vector.extract_strided_slice %540 {offsets = [0, 0], sizes = [2, 1], strides = [1, 1]} : vector<2x2xf32> to vector<2x1xf32>
    %542 = vector.extract_strided_slice %3 {offsets = [0, 0], sizes = [1, 8], strides = [1, 1]} : vector<2x8xf32> to vector<1x8xf32>
    %543 = vector.broadcast %541 : vector<2x1xf32> to vector<2x8xf32>
    %544 = vector.broadcast %542 : vector<1x8xf32> to vector<2x8xf32>
    %545 = arith.mulf %543, %544 : vector<2x8xf32>
    %546 = vector.broadcast %5 : vector<1x8xf32> to vector<2x8xf32>
    %547 = arith.addf %546, %545 : vector<2x8xf32>
    %548 = vector.extract_strided_slice %540 {offsets = [0, 1], sizes = [2, 1], strides = [1, 1]} : vector<2x2xf32> to vector<2x1xf32>
    %549 = vector.extract_strided_slice %3 {offsets = [1, 0], sizes = [1, 8], strides = [1, 1]} : vector<2x8xf32> to vector<1x8xf32>
    %550 = vector.broadcast %548 : vector<2x1xf32> to vector<2x8xf32>
    %551 = vector.broadcast %549 : vector<1x8xf32> to vector<2x8xf32>
    %552 = arith.mulf %550, %551 : vector<2x8xf32>
    %553 = arith.addf %547, %552 : vector<2x8xf32>
    %554 = vector.extract_strided_slice %505 {offsets = [0, 0], sizes = [2, 1], strides = [1, 1]} : vector<2x2xf32> to vector<2x1xf32>
    %555 = vector.extract_strided_slice %4 {offsets = [0, 0], sizes = [1, 8], strides = [1, 1]} : vector<2x8xf32> to vector<1x8xf32>
    %556 = vector.broadcast %554 : vector<2x1xf32> to vector<2x8xf32>
    %557 = vector.broadcast %555 : vector<1x8xf32> to vector<2x8xf32>
    %558 = arith.mulf %556, %557 : vector<2x8xf32>
    %559 = arith.addf %553, %558 : vector<2x8xf32>
    %560 = vector.extract_strided_slice %505 {offsets = [0, 1], sizes = [2, 1], strides = [1, 1]} : vector<2x2xf32> to vector<2x1xf32>
    %561 = vector.extract_strided_slice %4 {offsets = [1, 0], sizes = [1, 8], strides = [1, 1]} : vector<2x8xf32> to vector<1x8xf32>
    %562 = vector.broadcast %560 : vector<2x1xf32> to vector<2x8xf32>
    %563 = vector.broadcast %561 : vector<1x8xf32> to vector<2x8xf32>
    %564 = arith.mulf %562, %563 : vector<2x8xf32>
    %565 = arith.addf %559, %564 : vector<2x8xf32>
    %cst_48 = arith.constant 5.000000e-01 : f32
    %566 = vector.broadcast %cst_48 : f32 to vector<2x8xf32>
    %567 = arith.mulf %566, %565 : vector<2x8xf32>
    %568 = vector.shape_cast %12 : vector<1x8xi1> to vector<1x8xi1>
    %569 = vector.broadcast %568 : vector<1x8xi1> to vector<2x8xi1>
    %570 = arith.select %569, %567, %565 : vector<2x8xi1>, vector<2x8xf32>
    %571 = math.tanh %570 : vector<2x8xf32>
    %cst_49 = arith.constant 5.000000e-01 : f32
    %572 = vector.broadcast %cst_49 : f32 to vector<2x8xf32>
    %573 = arith.mulf %572, %571 : vector<2x8xf32>
    %cst_50 = arith.constant 5.000000e-01 : f32
    %574 = vector.broadcast %cst_50 : f32 to vector<2x8xf32>
    %575 = arith.addf %573, %574 : vector<2x8xf32>
    %576 = vector.shape_cast %12 : vector<1x8xi1> to vector<1x8xi1>
    %577 = vector.broadcast %576 : vector<1x8xi1> to vector<2x8xi1>
    %578 = arith.select %577, %575, %571 : vector<2x8xi1>, vector<2x8xf32>
    %579 = vector.extract_strided_slice %578 {offsets = [0, 0], sizes = [2, 2], strides = [1, 1]} : vector<2x8xf32> to vector<2x2xf32>
    %580 = vector.extract_strided_slice %578 {offsets = [0, 2], sizes = [2, 2], strides = [1, 1]} : vector<2x8xf32> to vector<2x2xf32>
    %581 = vector.extract_strided_slice %578 {offsets = [0, 4], sizes = [2, 2], strides = [1, 1]} : vector<2x8xf32> to vector<2x2xf32>
    %582 = vector.extract_strided_slice %578 {offsets = [0, 6], sizes = [2, 2], strides = [1, 1]} : vector<2x8xf32> to vector<2x2xf32>
    %583 = arith.mulf %580, %503 : vector<2x2xf32>
    %584 = arith.mulf %579, %582 : vector<2x2xf32>
    %585 = arith.addf %583, %584 : vector<2x2xf32>
    %586 = math.tanh %585 : vector<2x2xf32>
    %587 = arith.mulf %581, %586 : vector<2x2xf32>
    %588 = vector.extract_strided_slice %9 {offsets = [14, 0], sizes = [2, 8], strides = [1, 1]} : vector<16x8xf32> to vector<2x8xf32>
    %589 = vector.extract_strided_slice %540 {offsets = [0, 0], sizes = [2, 1], strides = [1, 1]} : vector<2x2xf32> to vector<2x1xf32>
    %590 = vector.extract_strided_slice %2 {offsets = [0, 0], sizes = [1, 8], strides = [1, 1]} : vector<2x8xf32> to vector<1x8xf32>
    %591 = vector.broadcast %589 : vector<2x1xf32> to vector<2x8xf32>
    %592 = vector.broadcast %590 : vector<1x8xf32> to vector<2x8xf32>
    %593 = arith.mulf %591, %592 : vector<2x8xf32>
    %594 = arith.addf %588, %593 : vector<2x8xf32>
    %595 = vector.extract_strided_slice %540 {offsets = [0, 1], sizes = [2, 1], strides = [1, 1]} : vector<2x2xf32> to vector<2x1xf32>
    %596 = vector.extract_strided_slice %2 {offsets = [1, 0], sizes = [1, 8], strides = [1, 1]} : vector<2x8xf32> to vector<1x8xf32>
    %597 = vector.broadcast %595 : vector<2x1xf32> to vector<2x8xf32>
    %598 = vector.broadcast %596 : vector<1x8xf32> to vector<2x8xf32>
    %599 = arith.mulf %597, %598 : vector<2x8xf32>
    %600 = arith.addf %594, %599 : vector<2x8xf32>
    %cst_51 = arith.constant 5.000000e-01 : f32
    %601 = vector.broadcast %cst_51 : f32 to vector<2x8xf32>
    %602 = arith.mulf %601, %600 : vector<2x8xf32>
    %603 = vector.shape_cast %12 : vector<1x8xi1> to vector<1x8xi1>
    %604 = vector.broadcast %603 : vector<1x8xi1> to vector<2x8xi1>
    %605 = arith.select %604, %602, %600 : vector<2x8xi1>, vector<2x8xf32>
    %606 = math.tanh %605 : vector<2x8xf32>
    %cst_52 = arith.constant 5.000000e-01 : f32
    %607 = vector.broadcast %cst_52 : f32 to vector<2x8xf32>
    %608 = arith.mulf %607, %606 : vector<2x8xf32>
    %cst_53 = arith.constant 5.000000e-01 : f32
    %609 = vector.broadcast %cst_53 : f32 to vector<2x8xf32>
    %610 = arith.addf %608, %609 : vector<2x8xf32>
    %611 = vector.shape_cast %12 : vector<1x8xi1> to vector<1x8xi1>
    %612 = vector.broadcast %611 : vector<1x8xi1> to vector<2x8xi1>
    %613 = arith.select %612, %610, %606 : vector<2x8xi1>, vector<2x8xf32>
    %614 = vector.extract_strided_slice %613 {offsets = [0, 0], sizes = [2, 2], strides = [1, 1]} : vector<2x8xf32> to vector<2x2xf32>
    %615 = vector.extract_strided_slice %613 {offsets = [0, 2], sizes = [2, 2], strides = [1, 1]} : vector<2x8xf32> to vector<2x2xf32>
    %616 = vector.extract_strided_slice %613 {offsets = [0, 4], sizes = [2, 2], strides = [1, 1]} : vector<2x8xf32> to vector<2x2xf32>
    %617 = vector.extract_strided_slice %613 {offsets = [0, 6], sizes = [2, 2], strides = [1, 1]} : vector<2x8xf32> to vector<2x2xf32>
    %618 = arith.mulf %615, %538 : vector<2x2xf32>
    %619 = arith.mulf %614, %617 : vector<2x2xf32>
    %620 = arith.addf %618, %619 : vector<2x2xf32>
    %621 = math.tanh %620 : vector<2x2xf32>
    %622 = arith.mulf %616, %621 : vector<2x2xf32>
    %623 = vector.extract_strided_slice %622 {offsets = [0, 0], sizes = [2, 1], strides = [1, 1]} : vector<2x2xf32> to vector<2x1xf32>
    %624 = vector.extract_strided_slice %3 {offsets = [0, 0], sizes = [1, 8], strides = [1, 1]} : vector<2x8xf32> to vector<1x8xf32>
    %625 = vector.broadcast %623 : vector<2x1xf32> to vector<2x8xf32>
    %626 = vector.broadcast %624 : vector<1x8xf32> to vector<2x8xf32>
    %627 = arith.mulf %625, %626 : vector<2x8xf32>
    %628 = vector.broadcast %5 : vector<1x8xf32> to vector<2x8xf32>
    %629 = arith.addf %628, %627 : vector<2x8xf32>
    %630 = vector.extract_strided_slice %622 {offsets = [0, 1], sizes = [2, 1], strides = [1, 1]} : vector<2x2xf32> to vector<2x1xf32>
    %631 = vector.extract_strided_slice %3 {offsets = [1, 0], sizes = [1, 8], strides = [1, 1]} : vector<2x8xf32> to vector<1x8xf32>
    %632 = vector.broadcast %630 : vector<2x1xf32> to vector<2x8xf32>
    %633 = vector.broadcast %631 : vector<1x8xf32> to vector<2x8xf32>
    %634 = arith.mulf %632, %633 : vector<2x8xf32>
    %635 = arith.addf %629, %634 : vector<2x8xf32>
    %636 = vector.extract_strided_slice %587 {offsets = [0, 0], sizes = [2, 1], strides = [1, 1]} : vector<2x2xf32> to vector<2x1xf32>
    %637 = vector.extract_strided_slice %4 {offsets = [0, 0], sizes = [1, 8], strides = [1, 1]} : vector<2x8xf32> to vector<1x8xf32>
    %638 = vector.broadcast %636 : vector<2x1xf32> to vector<2x8xf32>
    %639 = vector.broadcast %637 : vector<1x8xf32> to vector<2x8xf32>
    %640 = arith.mulf %638, %639 : vector<2x8xf32>
    %641 = arith.addf %635, %640 : vector<2x8xf32>
    %642 = vector.extract_strided_slice %587 {offsets = [0, 1], sizes = [2, 1], strides = [1, 1]} : vector<2x2xf32> to vector<2x1xf32>
    %643 = vector.extract_strided_slice %4 {offsets = [1, 0], sizes = [1, 8], strides = [1, 1]} : vector<2x8xf32> to vector<1x8xf32>
    %644 = vector.broadcast %642 : vector<2x1xf32> to vector<2x8xf32>
    %645 = vector.broadcast %643 : vector<1x8xf32> to vector<2x8xf32>
    %646 = arith.mulf %644, %645 : vector<2x8xf32>
    %647 = arith.addf %641, %646 : vector<2x8xf32>
    %cst_54 = arith.constant 5.000000e-01 : f32
    %648 = vector.broadcast %cst_54 : f32 to vector<2x8xf32>
    %649 = arith.mulf %648, %647 : vector<2x8xf32>
    %650 = vector.shape_cast %12 : vector<1x8xi1> to vector<1x8xi1>
    %651 = vector.broadcast %650 : vector<1x8xi1> to vector<2x8xi1>
    %652 = arith.select %651, %649, %647 : vector<2x8xi1>, vector<2x8xf32>
    %653 = math.tanh %652 : vector<2x8xf32>
    %cst_55 = arith.constant 5.000000e-01 : f32
    %654 = vector.broadcast %cst_55 : f32 to vector<2x8xf32>
    %655 = arith.mulf %654, %653 : vector<2x8xf32>
    %cst_56 = arith.constant 5.000000e-01 : f32
    %656 = vector.broadcast %cst_56 : f32 to vector<2x8xf32>
    %657 = arith.addf %655, %656 : vector<2x8xf32>
    %658 = vector.shape_cast %12 : vector<1x8xi1> to vector<1x8xi1>
    %659 = vector.broadcast %658 : vector<1x8xi1> to vector<2x8xi1>
    %660 = arith.select %659, %657, %653 : vector<2x8xi1>, vector<2x8xf32>
    %661 = vector.extract_strided_slice %660 {offsets = [0, 0], sizes = [2, 2], strides = [1, 1]} : vector<2x8xf32> to vector<2x2xf32>
    %662 = vector.extract_strided_slice %660 {offsets = [0, 2], sizes = [2, 2], strides = [1, 1]} : vector<2x8xf32> to vector<2x2xf32>
    %663 = vector.extract_strided_slice %660 {offsets = [0, 4], sizes = [2, 2], strides = [1, 1]} : vector<2x8xf32> to vector<2x2xf32>
    %664 = vector.extract_strided_slice %660 {offsets = [0, 6], sizes = [2, 2], strides = [1, 1]} : vector<2x8xf32> to vector<2x2xf32>
    %665 = arith.mulf %662, %585 : vector<2x2xf32>
    %666 = arith.mulf %661, %664 : vector<2x2xf32>
    %667 = arith.addf %665, %666 : vector<2x2xf32>
    %668 = math.tanh %667 : vector<2x2xf32>
    %669 = arith.mulf %663, %668 : vector<2x2xf32>
    %670 = vector.extract_strided_slice %95 {offsets = [0, 0], sizes = [1, 2], strides = [1, 1]} : vector<2x2xf32> to vector<1x2xf32>
    %671 = vector.extract_strided_slice %95 {offsets = [1, 0], sizes = [1, 2], strides = [1, 1]} : vector<2x2xf32> to vector<1x2xf32>
    %672 = tpu.concatenate %670, %671 in 1 : vector<1x2xf32>, vector<1x2xf32> -> vector<1x4xf32>
    %673 = vector.extract_strided_slice %177 {offsets = [0, 0], sizes = [1, 2], strides = [1, 1]} : vector<2x2xf32> to vector<1x2xf32>
    %674 = vector.extract_strided_slice %177 {offsets = [1, 0], sizes = [1, 2], strides = [1, 1]} : vector<2x2xf32> to vector<1x2xf32>
    %675 = tpu.concatenate %673, %674 in 1 : vector<1x2xf32>, vector<1x2xf32> -> vector<1x4xf32>
    %676 = vector.extract_strided_slice %259 {offsets = [0, 0], sizes = [1, 2], strides = [1, 1]} : vector<2x2xf32> to vector<1x2xf32>
    %677 = vector.extract_strided_slice %259 {offsets = [1, 0], sizes = [1, 2], strides = [1, 1]} : vector<2x2xf32> to vector<1x2xf32>
    %678 = tpu.concatenate %676, %677 in 1 : vector<1x2xf32>, vector<1x2xf32> -> vector<1x4xf32>
    %679 = vector.extract_strided_slice %341 {offsets = [0, 0], sizes = [1, 2], strides = [1, 1]} : vector<2x2xf32> to vector<1x2xf32>
    %680 = vector.extract_strided_slice %341 {offsets = [1, 0], sizes = [1, 2], strides = [1, 1]} : vector<2x2xf32> to vector<1x2xf32>
    %681 = tpu.concatenate %679, %680 in 1 : vector<1x2xf32>, vector<1x2xf32> -> vector<1x4xf32>
    %682 = vector.extract_strided_slice %423 {offsets = [0, 0], sizes = [1, 2], strides = [1, 1]} : vector<2x2xf32> to vector<1x2xf32>
    %683 = vector.extract_strided_slice %423 {offsets = [1, 0], sizes = [1, 2], strides = [1, 1]} : vector<2x2xf32> to vector<1x2xf32>
    %684 = tpu.concatenate %682, %683 in 1 : vector<1x2xf32>, vector<1x2xf32> -> vector<1x4xf32>
    %685 = vector.extract_strided_slice %505 {offsets = [0, 0], sizes = [1, 2], strides = [1, 1]} : vector<2x2xf32> to vector<1x2xf32>
    %686 = vector.extract_strided_slice %505 {offsets = [1, 0], sizes = [1, 2], strides = [1, 1]} : vector<2x2xf32> to vector<1x2xf32>
    %687 = tpu.concatenate %685, %686 in 1 : vector<1x2xf32>, vector<1x2xf32> -> vector<1x4xf32>
    %688 = vector.extract_strided_slice %587 {offsets = [0, 0], sizes = [1, 2], strides = [1, 1]} : vector<2x2xf32> to vector<1x2xf32>
    %689 = vector.extract_strided_slice %587 {offsets = [1, 0], sizes = [1, 2], strides = [1, 1]} : vector<2x2xf32> to vector<1x2xf32>
    %690 = tpu.concatenate %688, %689 in 1 : vector<1x2xf32>, vector<1x2xf32> -> vector<1x4xf32>
    %691 = vector.extract_strided_slice %669 {offsets = [0, 0], sizes = [1, 2], strides = [1, 1]} : vector<2x2xf32> to vector<1x2xf32>
    %692 = vector.extract_strided_slice %669 {offsets = [1, 0], sizes = [1, 2], strides = [1, 1]} : vector<2x2xf32> to vector<1x2xf32>
    %693 = tpu.concatenate %691, %692 in 1 : vector<1x2xf32>, vector<1x2xf32> -> vector<1x4xf32>
    %694 = vector.extract_strided_slice %622 {offsets = [0, 0], sizes = [1, 2], strides = [1, 1]} : vector<2x2xf32> to vector<1x2xf32>
    %695 = vector.extract_strided_slice %622 {offsets = [1, 0], sizes = [1, 2], strides = [1, 1]} : vector<2x2xf32> to vector<1x2xf32>
    %696 = tpu.concatenate %694, %695 in 1 : vector<1x2xf32>, vector<1x2xf32> -> vector<1x4xf32>
    %697 = vector.extract_strided_slice %669 {offsets = [0, 0], sizes = [1, 2], strides = [1, 1]} : vector<2x2xf32> to vector<1x2xf32>
    %698 = vector.extract_strided_slice %669 {offsets = [1, 0], sizes = [1, 2], strides = [1, 1]} : vector<2x2xf32> to vector<1x2xf32>
    %699 = tpu.concatenate %697, %698 in 1 : vector<1x2xf32>, vector<1x2xf32> -> vector<1x4xf32>
    %700 = vector.extract_strided_slice %620 {offsets = [0, 0], sizes = [1, 2], strides = [1, 1]} : vector<2x2xf32> to vector<1x2xf32>
    %701 = vector.extract_strided_slice %620 {offsets = [1, 0], sizes = [1, 2], strides = [1, 1]} : vector<2x2xf32> to vector<1x2xf32>
    %702 = tpu.concatenate %700, %701 in 1 : vector<1x2xf32>, vector<1x2xf32> -> vector<1x4xf32>
    %703 = vector.extract_strided_slice %667 {offsets = [0, 0], sizes = [1, 2], strides = [1, 1]} : vector<2x2xf32> to vector<1x2xf32>
    %704 = vector.extract_strided_slice %667 {offsets = [1, 0], sizes = [1, 2], strides = [1, 1]} : vector<2x2xf32> to vector<1x2xf32>
    %705 = tpu.concatenate %703, %704 in 1 : vector<1x2xf32>, vector<1x2xf32> -> vector<1x4xf32>
    %706 = tpu.concatenate %672, %675, %678, %681, %684, %687, %690, %693, %696, %699, %702, %705 in 0 : vector<1x4xf32>, vector<1x4xf32>, vector<1x4xf32>, vector<1x4xf32>, vector<1x4xf32>, vector<1x4xf32>, vector<1x4xf32>, vector<1x4xf32>, vector<1x4xf32>, vector<1x4xf32>, vector<1x4xf32>, vector<1x4xf32> -> vector<12x4xf32>
    %c0_57 = arith.constant 0 : index
    %c0_58 = arith.constant 0 : index
    %707 = vector.load %arg2[%c0_57, %c0_58] : memref<12x4xf32, #tpu.memory_space<vmem>>, vector<12x4xf32>
    tpu.vector_store %arg2[%c0_57, %c0_58], %706 {strides = array<i32>} : memref<12x4xf32, #tpu.memory_space<vmem>>, vector<12x4xf32>,
    return
  }
}

</mosaic_0001>

<bundles_post_ra>
// kernel: tpu_custom_call.1
= control target key start
LH: loop header
LB: loop body
LE: loop exit
PB: predicated region body
PF: predicated region fallthrough
CT: control target
= control target key end

     0   :  { %vm31_vm0 = vcmask 1041408   ;;  %vm24_vm1 = vcmask 80896   ;;  %vm1135_vm2 = vmmov 1   ;;  %v110_v5 = vlaneseq  ;;  %s1137_s21 = smov 2   ;;  %s1141_s28 = smov 126   ;;  %s1544_s1 = inlined_call_operand.vmem [shape: f32[18,8], index: 1, kind: input, shape index: {}]   ;;  %s1545_s0 = inlined_call_operand.vmem [shape: f32[16,10], index: 0, kind: input, shape index: {}]   ;;  %s1546_s2 = inlined_call_operand.vmem [shape: f32[12,4], index: 2, kind: output, shape index: {}]  }
   0x1   :  { %v11_v0 = vld [vmem:[%s1544_s1] sm:$0xff]  ;;  %v12_v1 = vld [vmem:[%s1544_s1 + $0x8] sm:$0x3]  ;;  %vm1029_vm3 = vmpackc.low %vm31_vm0, %vm1135_vm2  ;;  %v1138_v33 = vmov 5   ;;  %v1139_v34 = vmov 4   ;;  %vm875_vm5 = vcmask 15360  }
   0x2   :  { %v1028_v2 = vpack.c.bf16 %v12_v1, %v11_v0  ;;  %v18_v3 = vld [vmem:[%s1545_s0] sm:$0xff]  ;;  %v19_v4 = vld [vmem:[%s1545_s0 + $0x8] sm:$0xff]  ;;  %v114_v6 = vshrl.u32 %v110_v5, 7  ;;  %v1186_v19 = vand.u32 127, %v110_v5  ;;  %s1136_s0 = smov 122   ;;  %1042 = vset.pattern.permute.xlu0 %v1138_v33  ;;  %1041 = vset.pattern.permute.xlu1 %v1139_v34  ;;  %vm988_vm6 = vcmask 1040384  }
   0x3   :  { %1025 = vmatprep.mubr.msk.f32.mxu0 %vm24_vm1, %v18_v3  ;;  %v14_v8 = vld [vmem:[%s1544_s1 + $0xb] sm:$0x3]  ;;  %v1012_v12 = vld [vmem:[%s1544_s1 + $0xa] ss:$0 sm:$0xff]  ;;  %v15_v38 = vld [vmem:[%s1544_s1 + $0xd] sm:$0x3] }
   0x4   :  { %1030 = vmatprep.subr.msk.bf16.mxu0 %vm1029_vm3, %v1028_v2  ;;  %v115_v7 = vsub.s32 0, %v114_v6  ;;  %v121_v9 = vsub.s32 1, %v114_v6  ;;  %vm112_vm4 = vcmp.lt.s32.totalorder %v1186_v19, 6  ;;  %v16_v39 = vld [vmem:[%s1544_s1 + $0xf] sm:$0x3]  ;;  %vm991_vm7 = vcmask 1042432  }
   0x5   :  { %1033 = vmatpush3.bf16.msk.msra.mxu0 %vm1029_vm3, %v1028_v2  ;;  %v1216_v44 = vld [vmem:[%s1544_s1 + $0x11] ss:$0 sm:$0xff]  ;;  %s1140_s1 = smov 124   ;;  %vm993_vm8 = vcmask 1043456   ;;  %vm995_vm9 = vcmask 1044480   ;;  %vm997_vm10 = vcmask 1045504  }
   0x6   :  { %v1173_v10 = vrot.slane %v14_v8, %v115_v7  ;;  %v1175_v11 = vrot.slane %v14_v8, %v121_v9  ;;  %v1207_v40 = vrot.slane %v15_v38, %v115_v7  ;;  %v1209_v41 = vrot.slane %v15_v38, %v121_v9 }
   0x7   :  { %v1211_v42 = vrot.slane %v16_v39, %v115_v7  ;;  %v1218_v46 = vrot.slane %v16_v39, %v121_v9  ;;  %vm999_vm11 = vcmask 1046528   ;;  %vm1004_vm12 = vcmask 31744  }
   0x8   :  { %1026 = vmatmul.mubr.msk.f32.vlgmr.msra.gmra.mrb[0].mxu0 %vm24_vm1, %v19_v4  ;;  %v117_v14 = vmul.f32 0.0, %v1173_v10  ;;  %v123_v18 = vmul.f32 0.0, %v1175_v11  ;;  %vm1006_vm13 = vcmask 27648  }
   0x9   :  { %v179_v51 = vmul.f32 0.0, %v1211_v42  ;;  %v185_v55 = vmul.f32 0.0, %v1218_v46 }
  0xdb   :  { %v1027_v13 = vpop.f32.mrb[0].mxu0 }
  0xdc   :  { %v1181_v15 = vadd.f32 %v1027_v13, %v1012_v12  ;;  %v101_v16 = vpop.f32.mrb[1].mxu0 }
  0xdd   :  { %v1183_v17 = vadd.f32 %v1012_v12, %v101_v16 }
  0xdf   :  { %v118_v20 = vadd.f32 %v117_v14, %v1183_v17 }
  0xe1   :  { %v124_v21 = vadd.f32 %v123_v18, %v118_v20 }
  0xe3   :  { %v125_v22 = vmul.f32 0.5, %v124_v21 }
  0xe5   :  { %v128_v23 = vsel %vm112_vm4, %v125_v22, %v124_v21 }
  0xe6   :  { %1071 = vtanh.f32 %v128_v23 }
  0xf0   :  { %v1072_v24 = vpop.eup %1071 }
  0xf1   :  { %v130_v25 = vmul.f32 0.5, %v1072_v24 }
  0xf3   :  { %v131_v26 = vadd.f32 0.5, %v130_v25 }
  0xf5   :  { %v132_v27 = vsel %vm112_vm4, %v131_v26, %v1072_v24 }
  0xf6   :  { %135 = vrot.lane.b32.xlu0 %v132_v27, %s1136_s0  ;;  %v133_v30 = vmul.f32 0.0, %v132_v27 }
 0x168   :  { %v136_v28 = vpop.permute.xlu0 %135 }
 0x169   :  { %v138_v29 = vmul.f32 %v136_v28, %v132_v27 }
 0x16b   :  { %140 = vrot.lane.b32.xlu0 %v138_v29, %s1137_s21 }
 0x1dd   :  { %v141_v31 = vpop.permute.xlu0 %140 }
 0x1de   :  { %v143_v32 = vadd.f32 %v141_v31, %v133_v30 }
 0x1e0   :  { %1073 = vtanh.f32 %v143_v32  ;;  %v227_v16 = vrot.slane %v143_v32, 6 }
 0x1ea   :  { %v1074_v35 = vpop.eup %1073 }
 0x1eb   :  { %146 = vrot.lane.b32.xlu1 %v1074_v35, %s1137_s21 }
 0x25d   :  { %v147_v36 = vpop.permute.xlu1 %146 }
 0x25e   :  { %v149_v37 = vmul.f32 %v147_v36, %v132_v27 }
 0x260   :  { %166 = vperm.xlu0 %1042, %v149_v37   ;;  %152 = vperm.xlu1 %1041, %v149_v37  }
 0x264   :  { %1043 = vset.pattern.permute.xlu0 %v1139_v34  ;;  %1044 = vset.pattern.permute.xlu1 %v1138_v33 }
 0x2df   :  { %v167_v43 = vpop.permute.xlu0 %166  ;;  %v153_v45 = vpop.permute.xlu1 %152 }
 0x2e0   :  { %v215_v47 = vmul.f32 %v167_v43, %v1175_v11  ;;  %v159_v48 = vmul.f32 %v1207_v40, %v153_v45  ;;  %v210_v49 = vmul.f32 %v153_v45, %v1173_v10  ;;  %v173_v50 = vmul.f32 %v1209_v41, %v167_v43 }
 0x2e2   :  { %v164_v52 = vadd.f32 %v1216_v44, %v159_v48  ;;  %v212_v53 = vrot.slane %v210_v49, 6  ;;  %v217_v54 = vrot.slane %v215_v47, 6 }
 0x2e4   :  { %v174_v56 = vadd.f32 %v173_v50, %v164_v52  ;;  %v214_v57 = vadd.f32 %v212_v53, %v1183_v17 }
 0x2e6   :  { %v180_v58 = vadd.f32 %v179_v51, %v174_v56  ;;  %v219_v59 = vadd.f32 %v217_v54, %v214_v57 }
 0x2e8   :  { %v186_v60 = vadd.f32 %v185_v55, %v180_v58  ;;  %v220_v61 = vmul.f32 0.5, %v219_v59 }
 0x2ea   :  { %v187_v62 = vmul.f32 0.5, %v186_v60  ;;  %v221_v63 = vsel %vm112_vm4, %v220_v61, %v219_v59 }
 0x2eb   :  { %1075 = vtanh.f32 %v221_v63 }
 0x2ec   :  { %v188_v0 = vsel %vm112_vm4, %v187_v62, %v186_v60 }
 0x2ed   :  { %1077 = vtanh.f32 %v188_v0 }
 0x2f5   :  { %v1076_v1 = vpop.eup %1075 }
 0x2f6   :  { %v223_v2 = vmul.f32 0.5, %v1076_v1 }
 0x2f7   :  { %v1078_v3 = vpop.eup %1077 }
 0x2f8   :  { %v224_v4 = vadd.f32 0.5, %v223_v2  ;;  %v190_v5 = vmul.f32 0.5, %v1078_v3 }
 0x2fa   :  { %v225_v6 = vsel %vm112_vm4, %v224_v4, %v1076_v1  ;;  %v191_v7 = vadd.f32 0.5, %v190_v5 }
 0x2fb   :  { %231 = vrot.lane.b32.xlu1 %v225_v6, %s1136_s0  ;;  %v229_v18 = vmul.f32 %v227_v16, %v225_v6 }
 0x2fc   :  { %v192_v8 = vsel %vm112_vm4, %v191_v7, %v1078_v3 }
 0x2fd   :  { %v193_v22 = vmul.f32 0.0, %v192_v8 }
 0x2ff   :  { %195 = vrot.lane.b32.xlu1 %v192_v8, %s1136_s0 }
 0x36d   :  { %v232_v9 = vpop.permute.xlu1 %231 }
 0x36e   :  { %v234_v12 = vmul.f32 %v232_v9, %v225_v6 }
 0x370   :  { %236 = vrot.lane.b32.xlu0 %v234_v12, %s1137_s21 }
 0x371   :  { %v196_v13 = vpop.permute.xlu1 %195 }
 0x372   :  { %v198_v14 = vmul.f32 %v196_v13, %v192_v8 }
 0x374   :  { %200 = vrot.lane.b32.xlu1 %v198_v14, %s1137_s21 }
 0x3e2   :  { %v237_v20 = vpop.permute.xlu0 %236 }
 0x3e3   :  { %v1240_v21 = vadd.f32 %v237_v20, %v229_v18 }
 0x3e5   :  { %1079 = vtanh.f32 %v1240_v21  ;;  %v321_v12 = vrot.slane %v1240_v21, 6 }
 0x3e6   :  { %v201_v23 = vpop.permute.xlu1 %200 }
 0x3e7   :  { %v1243_v24 = vadd.f32 %v201_v23, %v193_v22 }
 0x3e9   :  { %1081 = vtanh.f32 %v1243_v24  ;;  %v285_v18 = vrot.slane %v1243_v24, 6 }
 0x3ef   :  { %v1080_v25 = vpop.eup %1079 }
 0x3f0   :  { %242 = vrot.lane.b32.xlu0 %v1080_v25, %s1137_s21 }
 0x3f3   :  { %v1082_v26 = vpop.eup %1081 }
 0x3f4   :  { %206 = vrot.lane.b32.xlu1 %v1082_v26, %s1137_s21 }
 0x462   :  { %v243_v27 = vpop.permute.xlu0 %242 }
 0x463   :  { %v245_v28 = vmul.f32 %v243_v27, %v225_v6 }
 0x465   :  { %254 = vperm.xlu1 %1044, %v245_v28   ;;  %248 = vperm.xlu0 %1043, %v245_v28  }
 0x466   :  { %v207_v29 = vpop.permute.xlu1 %206 }
 0x467   :  { %v1248_v30 = vmul.f32 %v207_v29, %v192_v8 }
 0x469   :  { %1045 = vset.pattern.permute.xlu1 %v1139_v34  ;;  %1046 = vset.pattern.permute.xlu0 %v1138_v33 }
 0x46a   :  { %261 = vperm.xlu1 %1045, %v1248_v30   ;;  %270 = vperm.xlu0 %1046, %v1248_v30  }
 0x46e   :  { %1048 = vset.pattern.permute.xlu1 %v1138_v33  ;;  %1047 = vset.pattern.permute.xlu0 %v1139_v34 }
 0x4e4   :  { %v255_v31 = vpop.permute.xlu1 %254  ;;  %v249_v32 = vpop.permute.xlu0 %248 }
 0x4e5   :  { %v309_v35 = vmul.f32 %v255_v31, %v1175_v11  ;;  %v251_v36 = vmul.f32 %v249_v32, %v1207_v40  ;;  %v304_v37 = vmul.f32 %v249_v32, %v1173_v10  ;;  %v257_v49 = vmul.f32 %v255_v31, %v1209_v41 }
 0x4e7   :  { %v306_v38 = vrot.slane %v304_v37, 6  ;;  %v252_v39 = vadd.f32 %v1216_v44, %v251_v36  ;;  %v311_v43 = vrot.slane %v309_v35, 6 }
 0x4e9   :  { %v308_v45 = vadd.f32 %v306_v38, %v1183_v17  ;;  %v262_v47 = vpop.permute.xlu1 %261  ;;  %v271_v48 = vpop.permute.xlu0 %270  ;;  %v258_v53 = vadd.f32 %v257_v49, %v252_v39 }
 0x4ea   :  { %v264_v50 = vmul.f32 %v262_v47, %v1211_v42  ;;  %v273_v51 = vmul.f32 %v271_v48, %v1218_v46 }
 0x4eb   :  { %v313_v52 = vadd.f32 %v311_v43, %v308_v45 }
 0x4ec   :  { %v266_v54 = vrot.slane %v264_v50, 6  ;;  %v275_v57 = vrot.slane %v273_v51, 6 }
 0x4ed   :  { %v314_v55 = vmul.f32 0.5, %v313_v52 }
 0x4ee   :  { %v268_v56 = vadd.f32 %v266_v54, %v258_v53 }
 0x4ef   :  { %v315_v58 = vsel %vm112_vm4, %v314_v55, %v313_v52 }
 0x4f0   :  { %1083 = vtanh.f32 %v315_v58  ;;  %v277_v59 = vadd.f32 %v275_v57, %v268_v56 }
 0x4f2   :  { %v278_v60 = vmul.f32 0.5, %v277_v59 }
 0x4f4   :  { %v279_v61 = vsel %vm112_vm4, %v278_v60, %v277_v59 }
 0x4f5   :  { %1085 = vtanh.f32 %v279_v61 }
 0x4fa   :  { %v1084_v62 = vpop.eup %1083 }
 0x4fb   :  { %v317_v63 = vmul.f32 0.5, %v1084_v62 }
 0x4fd   :  { %v318_v0 = vadd.f32 0.5, %v317_v63 }
 0x4ff   :  { %v1086_v1 = vpop.eup %1085  ;;  %v319_v2 = vsel %vm112_vm4, %v318_v0, %v1084_v62 }
 0x500   :  { %325 = vrot.lane.b32.xlu1 %v319_v2, %s1136_s0  ;;  %v281_v3 = vmul.f32 0.5, %v1086_v1  ;;  %v323_v13 = vmul.f32 %v321_v12, %v319_v2 }
 0x502   :  { %v282_v4 = vadd.f32 0.5, %v281_v3 }
 0x504   :  { %v283_v5 = vsel %vm112_vm4, %v282_v4, %v1086_v1 }
 0x505   :  { %289 = vrot.lane.b32.xlu1 %v283_v5, %s1136_s0  ;;  %v287_v20 = vmul.f32 %v285_v18, %v283_v5 }
 0x572   :  { %v326_v6 = vpop.permute.xlu1 %325 }
 0x573   :  { %v328_v7 = vmul.f32 %v326_v6, %v319_v2 }
 0x575   :  { %330 = vrot.lane.b32.xlu0 %v328_v7, %s1137_s21 }
 0x577   :  { %v290_v8 = vpop.permute.xlu1 %289 }
 0x578   :  { %v292_v9 = vmul.f32 %v290_v8, %v283_v5 }
 0x57a   :  { %294 = vrot.lane.b32.xlu1 %v292_v9, %s1137_s21 }
 0x5e7   :  { %v331_v14 = vpop.permute.xlu0 %330 }
 0x5e8   :  { %v1277_v16 = vadd.f32 %v331_v14, %v323_v13 }
 0x5ea   :  { %1087 = vtanh.f32 %v1277_v16  ;;  %v415_v8 = vrot.slane %v1277_v16, 6 }
 0x5ec   :  { %v295_v22 = vpop.permute.xlu1 %294 }
 0x5ed   :  { %v1281_v23 = vadd.f32 %v295_v22, %v287_v20 }
 0x5ef   :  { %1089 = vtanh.f32 %v1281_v23  ;;  %v379_v14 = vrot.slane %v1281_v23, 6 }
 0x5f4   :  { %v1088_v25 = vpop.eup %1087 }
 0x5f5   :  { %336 = vrot.lane.b32.xlu0 %v1088_v25, %s1137_s21 }
 0x5f9   :  { %v1090_v26 = vpop.eup %1089 }
 0x5fa   :  { %300 = vrot.lane.b32.xlu1 %v1090_v26, %s1137_s21 }
 0x667   :  { %v337_v21 = vpop.permute.xlu0 %336 }
 0x668   :  { %v339_v27 = vmul.f32 %v337_v21, %v319_v2 }
 0x66a   :  { %348 = vperm.xlu1 %1048, %v339_v27   ;;  %342 = vperm.xlu0 %1047, %v339_v27  }
 0x66c   :  { %v301_v28 = vpop.permute.xlu1 %300 }
 0x66d   :  { %v1286_v24 = vmul.f32 %v301_v28, %v283_v5 }
 0x66e   :  { %1049 = vset.pattern.permute.xlu1 %v1139_v34  ;;  %1050 = vset.pattern.permute.xlu0 %v1138_v33 }
 0x66f   :  { %355 = vperm.xlu1 %1049, %v1286_v24   ;;  %364 = vperm.xlu0 %1050, %v1286_v24  }
 0x673   :  { %1052 = vset.pattern.permute.xlu1 %v1138_v33  ;;  %1051 = vset.pattern.permute.xlu0 %v1139_v34 }
 0x6e9   :  { %v349_v29 = vpop.permute.xlu1 %348  ;;  %v343_v31 = vpop.permute.xlu0 %342 }
 0x6ea   :  { %v403_v32 = vmul.f32 %v349_v29, %v1175_v11  ;;  %v345_v35 = vmul.f32 %v343_v31, %v1207_v40  ;;  %v398_v36 = vmul.f32 %v343_v31, %v1173_v10  ;;  %v351_v48 = vmul.f32 %v349_v29, %v1209_v41 }
 0x6ec   :  { %v400_v37 = vrot.slane %v398_v36, 6  ;;  %v346_v38 = vadd.f32 %v1216_v44, %v345_v35  ;;  %v405_v39 = vrot.slane %v403_v32, 6 }
 0x6ee   :  { %v402_v43 = vadd.f32 %v400_v37, %v1183_v17  ;;  %v356_v45 = vpop.permute.xlu1 %355  ;;  %v365_v47 = vpop.permute.xlu0 %364  ;;  %v352_v52 = vadd.f32 %v351_v48, %v346_v38 }
 0x6ef   :  { %v358_v49 = vmul.f32 %v356_v45, %v1211_v42  ;;  %v367_v50 = vmul.f32 %v365_v47, %v1218_v46 }
 0x6f0   :  { %v407_v51 = vadd.f32 %v405_v39, %v402_v43 }
 0x6f1   :  { %v360_v53 = vrot.slane %v358_v49, 6  ;;  %v369_v56 = vrot.slane %v367_v50, 6 }
 0x6f2   :  { %v408_v54 = vmul.f32 0.5, %v407_v51 }
 0x6f3   :  { %v362_v55 = vadd.f32 %v360_v53, %v352_v52 }
 0x6f4   :  { %v409_v57 = vsel %vm112_vm4, %v408_v54, %v407_v51 }
 0x6f5   :  { %1091 = vtanh.f32 %v409_v57  ;;  %v371_v58 = vadd.f32 %v369_v56, %v362_v55 }
 0x6f7   :  { %v372_v17 = vmul.f32 0.5, %v371_v58 }
 0x6f9   :  { %v373_v59 = vsel %vm112_vm4, %v372_v17, %v371_v58 }
 0x6fa   :  { %1093 = vtanh.f32 %v373_v59 }
 0x6ff   :  { %v1092_v60 = vpop.eup %1091 }
 0x700   :  { %v411_v61 = vmul.f32 0.5, %v1092_v60 }
 0x702   :  { %v412_v62 = vadd.f32 0.5, %v411_v61 }
 0x704   :  { %v1094_v63 = vpop.eup %1093  ;;  %v413_v0 = vsel %vm112_vm4, %v412_v62, %v1092_v60 }
 0x705   :  { %419 = vrot.lane.b32.xlu1 %v413_v0, %s1136_s0  ;;  %v375_v1 = vmul.f32 0.5, %v1094_v63  ;;  %v417_v9 = vmul.f32 %v415_v8, %v413_v0 }
 0x707   :  { %v376_v2 = vadd.f32 0.5, %v375_v1 }
 0x709   :  { %v377_v3 = vsel %vm112_vm4, %v376_v2, %v1094_v63 }
 0x70a   :  { %383 = vrot.lane.b32.xlu1 %v377_v3, %s1136_s0  ;;  %v381_v18 = vmul.f32 %v379_v14, %v377_v3 }
 0x777   :  { %v420_v4 = vpop.permute.xlu1 %419 }
 0x778   :  { %v422_v5 = vmul.f32 %v420_v4, %v413_v0 }
 0x77a   :  { %424 = vrot.lane.b32.xlu0 %v422_v5, %s1137_s21 }
 0x77c   :  { %v384_v6 = vpop.permute.xlu1 %383 }
 0x77d   :  { %v386_v7 = vmul.f32 %v384_v6, %v377_v3 }
 0x77f   :  { %388 = vrot.lane.b32.xlu1 %v386_v7, %s1137_s21 }
 0x7ec   :  { %v425_v12 = vpop.permute.xlu0 %424 }
 0x7ed   :  { %v1315_v13 = vadd.f32 %v425_v12, %v417_v9 }
 0x7ef   :  { %1095 = vtanh.f32 %v1315_v13  ;;  %v509_v7 = vrot.slane %v1315_v13, 6 }
 0x7f1   :  { %v389_v20 = vpop.permute.xlu1 %388 }
 0x7f2   :  { %v1319_v22 = vadd.f32 %v389_v20, %v381_v18 }
 0x7f4   :  { %1097 = vtanh.f32 %v1319_v22  ;;  %v473_v14 = vrot.slane %v1319_v22, 6 }
 0x7f9   :  { %v1096_v25 = vpop.eup %1095 }
 0x7fa   :  { %430 = vrot.lane.b32.xlu0 %v1096_v25, %s1137_s21 }
 0x7fe   :  { %v1098_v26 = vpop.eup %1097 }
 0x7ff   :  { %394 = vrot.lane.b32.xlu1 %v1098_v26, %s1137_s21 }
 0x86c   :  { %v431_v16 = vpop.permute.xlu0 %430 }
 0x86d   :  { %v433_v21 = vmul.f32 %v431_v16, %v413_v0 }
 0x86f   :  { %442 = vperm.xlu1 %1052, %v433_v21   ;;  %436 = vperm.xlu0 %1051, %v433_v21  }
 0x871   :  { %v395_v27 = vpop.permute.xlu1 %394 }
 0x872   :  { %v1324_v23 = vmul.f32 %v395_v27, %v377_v3 }
 0x873   :  { %1053 = vset.pattern.permute.xlu1 %v1139_v34  ;;  %1054 = vset.pattern.permute.xlu0 %v1138_v33 }
 0x874   :  { %449 = vperm.xlu1 %1053, %v1324_v23   ;;  %458 = vperm.xlu0 %1054, %v1324_v23  }
 0x878   :  { %1056 = vset.pattern.permute.xlu1 %v1138_v33  ;;  %1055 = vset.pattern.permute.xlu0 %v1139_v34 }
 0x8ee   :  { %v443_v28 = vpop.permute.xlu1 %442  ;;  %v437_v29 = vpop.permute.xlu0 %436 }
 0x8ef   :  { %v497_v31 = vmul.f32 %v443_v28, %v1175_v11  ;;  %v439_v32 = vmul.f32 %v437_v29, %v1207_v40  ;;  %v492_v35 = vmul.f32 %v437_v29, %v1173_v10  ;;  %v445_v47 = vmul.f32 %v443_v28, %v1209_v41 }
 0x8f1   :  { %v494_v36 = vrot.slane %v492_v35, 6  ;;  %v440_v37 = vadd.f32 %v1216_v44, %v439_v32  ;;  %v499_v38 = vrot.slane %v497_v31, 6 }
 0x8f3   :  { %v496_v39 = vadd.f32 %v494_v36, %v1181_v15  ;;  %v450_v43 = vpop.permute.xlu1 %449  ;;  %v459_v45 = vpop.permute.xlu0 %458  ;;  %v446_v51 = vadd.f32 %v445_v47, %v440_v37 }
 0x8f4   :  { %v452_v48 = vmul.f32 %v450_v43, %v1211_v42  ;;  %v461_v49 = vmul.f32 %v459_v45, %v1218_v46 }
 0x8f5   :  { %v501_v50 = vadd.f32 %v499_v38, %v496_v39 }
 0x8f6   :  { %v454_v52 = vrot.slane %v452_v48, 6  ;;  %v463_v55 = vrot.slane %v461_v49, 6 }
 0x8f7   :  { %v502_v53 = vmul.f32 0.5, %v501_v50 }
 0x8f8   :  { %v456_v54 = vadd.f32 %v454_v52, %v446_v51 }
 0x8f9   :  { %v503_v56 = vsel %vm112_vm4, %v502_v53, %v501_v50 }
 0x8fa   :  { %1099 = vtanh.f32 %v503_v56  ;;  %v465_v57 = vadd.f32 %v463_v55, %v456_v54 }
 0x8fc   :  { %v466_v58 = vmul.f32 0.5, %v465_v57 }
 0x8fe   :  { %v467_v17 = vsel %vm112_vm4, %v466_v58, %v465_v57 }
 0x8ff   :  { %1101 = vtanh.f32 %v467_v17 }
 0x904   :  { %v1100_v59 = vpop.eup %1099 }
 0x905   :  { %v505_v60 = vmul.f32 0.5, %v1100_v59 }
 0x907   :  { %v506_v61 = vadd.f32 0.5, %v505_v60 }
 0x909   :  { %v1102_v62 = vpop.eup %1101  ;;  %v507_v63 = vsel %vm112_vm4, %v506_v61, %v1100_v59 }
 0x90a   :  { %513 = vrot.lane.b32.xlu1 %v507_v63, %s1136_s0  ;;  %v469_v0 = vmul.f32 0.5, %v1102_v62  ;;  %v511_v8 = vmul.f32 %v509_v7, %v507_v63 }
 0x90c   :  { %v470_v1 = vadd.f32 0.5, %v469_v0 }
 0x90e   :  { %v471_v2 = vsel %vm112_vm4, %v470_v1, %v1102_v62 }
 0x90f   :  { %477 = vrot.lane.b32.xlu1 %v471_v2, %s1136_s0  ;;  %v475_v18 = vmul.f32 %v473_v14, %v471_v2 }
 0x97c   :  { %v514_v3 = vpop.permute.xlu1 %513 }
 0x97d   :  { %v516_v4 = vmul.f32 %v514_v3, %v507_v63 }
 0x97f   :  { %518 = vrot.lane.b32.xlu0 %v516_v4, %s1137_s21 }
 0x981   :  { %v478_v5 = vpop.permute.xlu1 %477 }
 0x982   :  { %v480_v6 = vmul.f32 %v478_v5, %v471_v2 }
 0x984   :  { %482 = vrot.lane.b32.xlu1 %v480_v6, %s1137_s21 }
 0x9f1   :  { %v519_v9 = vpop.permute.xlu0 %518 }
 0x9f2   :  { %v1353_v12 = vadd.f32 %v519_v9, %v511_v8 }
 0x9f4   :  { %1103 = vtanh.f32 %v1353_v12  ;;  %v603_v7 = vrot.slane %v1353_v12, 6 }
 0x9f6   :  { %v483_v20 = vpop.permute.xlu1 %482 }
 0x9f7   :  { %v1357_v25 = vadd.f32 %v483_v20, %v475_v18 }
 0x9f9   :  { %1105 = vtanh.f32 %v1357_v25  ;;  %v567_v18 = vrot.slane %v1357_v25, 6 }
 0x9fe   :  { %v1104_v26 = vpop.eup %1103 }
 0x9ff   :  { %524 = vrot.lane.b32.xlu0 %v1104_v26, %s1137_s21 }
 0xa03   :  { %v1106_v16 = vpop.eup %1105 }
 0xa04   :  { %488 = vrot.lane.b32.xlu1 %v1106_v16, %s1137_s21 }
 0xa71   :  { %v525_v13 = vpop.permute.xlu0 %524 }
 0xa72   :  { %v527_v21 = vmul.f32 %v525_v13, %v507_v63 }
 0xa74   :  { %536 = vperm.xlu1 %1056, %v527_v21   ;;  %530 = vperm.xlu0 %1055, %v527_v21  }
 0xa76   :  { %v489_v27 = vpop.permute.xlu1 %488 }
 0xa77   :  { %v1362_v22 = vmul.f32 %v489_v27, %v471_v2 }
 0xa78   :  { %1057 = vset.pattern.permute.xlu1 %v1139_v34  ;;  %1058 = vset.pattern.permute.xlu0 %v1138_v33 }
 0xa79   :  { %543 = vperm.xlu1 %1057, %v1362_v22   ;;  %552 = vperm.xlu0 %1058, %v1362_v22  }
 0xa7d   :  { %1060 = vset.pattern.permute.xlu1 %v1138_v33  ;;  %1059 = vset.pattern.permute.xlu0 %v1139_v34 }
 0xaf3   :  { %v537_v28 = vpop.permute.xlu1 %536  ;;  %v531_v29 = vpop.permute.xlu0 %530 }
 0xaf4   :  { %v591_v31 = vmul.f32 %v537_v28, %v1175_v11  ;;  %v533_v32 = vmul.f32 %v531_v29, %v1207_v40  ;;  %v586_v35 = vmul.f32 %v531_v29, %v1173_v10  ;;  %v539_v47 = vmul.f32 %v537_v28, %v1209_v41 }
 0xaf6   :  { %v588_v36 = vrot.slane %v586_v35, 6  ;;  %v534_v37 = vadd.f32 %v1216_v44, %v533_v32  ;;  %v593_v38 = vrot.slane %v591_v31, 6 }
 0xaf8   :  { %v590_v39 = vadd.f32 %v588_v36, %v1181_v15  ;;  %v544_v43 = vpop.permute.xlu1 %543  ;;  %v553_v45 = vpop.permute.xlu0 %552  ;;  %v540_v51 = vadd.f32 %v539_v47, %v534_v37 }
 0xaf9   :  { %v546_v48 = vmul.f32 %v544_v43, %v1211_v42  ;;  %v555_v49 = vmul.f32 %v553_v45, %v1218_v46 }
 0xafa   :  { %v595_v50 = vadd.f32 %v593_v38, %v590_v39 }
 0xafb   :  { %v548_v52 = vrot.slane %v546_v48, 6  ;;  %v557_v55 = vrot.slane %v555_v49, 6 }
 0xafc   :  { %v596_v53 = vmul.f32 0.5, %v595_v50 }
 0xafd   :  { %v550_v54 = vadd.f32 %v548_v52, %v540_v51 }
 0xafe   :  { %v597_v56 = vsel %vm112_vm4, %v596_v53, %v595_v50 }
 0xaff   :  { %1107 = vtanh.f32 %v597_v56  ;;  %v559_v57 = vadd.f32 %v557_v55, %v550_v54 }
 0xb01   :  { %v560_v58 = vmul.f32 0.5, %v559_v57 }
 0xb03   :  { %v561_v17 = vsel %vm112_vm4, %v560_v58, %v559_v57 }
 0xb04   :  { %1109 = vtanh.f32 %v561_v17 }
 0xb09   :  { %v1108_v59 = vpop.eup %1107 }
 0xb0a   :  { %v599_v60 = vmul.f32 0.5, %v1108_v59 }
 0xb0c   :  { %v600_v61 = vadd.f32 0.5, %v599_v60 }
 0xb0e   :  { %v1110_v62 = vpop.eup %1109  ;;  %v601_v63 = vsel %vm112_vm4, %v600_v61, %v1108_v59 }
 0xb0f   :  { %607 = vrot.lane.b32.xlu1 %v601_v63, %s1136_s0  ;;  %v563_v0 = vmul.f32 0.5, %v1110_v62  ;;  %v605_v8 = vmul.f32 %v603_v7, %v601_v63 }
 0xb11   :  { %v564_v1 = vadd.f32 0.5, %v563_v0 }
 0xb13   :  { %v565_v2 = vsel %vm112_vm4, %v564_v1, %v1110_v62 }
 0xb14   :  { %571 = vrot.lane.b32.xlu1 %v565_v2, %s1136_s0  ;;  %v569_v20 = vmul.f32 %v567_v18, %v565_v2 }
 0xb81   :  { %v608_v3 = vpop.permute.xlu1 %607 }
 0xb82   :  { %v610_v4 = vmul.f32 %v608_v3, %v601_v63 }
 0xb84   :  { %612 = vrot.lane.b32.xlu0 %v610_v4, %s1137_s21 }
 0xb86   :  { %v572_v5 = vpop.permute.xlu1 %571 }
 0xb87   :  { %v574_v6 = vmul.f32 %v572_v5, %v565_v2 }
 0xb89   :  { %576 = vrot.lane.b32.xlu1 %v574_v6, %s1137_s21 }
 0xbf6   :  { %v613_v9 = vpop.permute.xlu0 %612 }
 0xbf7   :  { %v1391_v14 = vadd.f32 %v613_v9, %v605_v8 }
 0xbf9   :  { %1111 = vtanh.f32 %v1391_v14  ;;  %v697_v8 = vrot.slane %v1391_v14, 6 }
 0xbfb   :  { %v577_v26 = vpop.permute.xlu1 %576 }
 0xbfc   :  { %v1395_v16 = vadd.f32 %v577_v26, %v569_v20 }
 0xbfe   :  { %1113 = vtanh.f32 %v1395_v16  ;;  %v661_v26 = vrot.slane %v1395_v16, 6 }
 0xc03   :  { %v1112_v13 = vpop.eup %1111 }
 0xc04   :  { %618 = vrot.lane.b32.xlu0 %v1112_v13, %s1137_s21 }
 0xc08   :  { %v1114_v21 = vpop.eup %1113 }
 0xc09   :  { %582 = vrot.lane.b32.xlu1 %v1114_v21, %s1137_s21 }
 0xc76   :  { %v619_v12 = vpop.permute.xlu0 %618 }
 0xc77   :  { %v621_v27 = vmul.f32 %v619_v12, %v601_v63 }
 0xc79   :  { %630 = vperm.xlu1 %1060, %v621_v27   ;;  %624 = vperm.xlu0 %1059, %v621_v27  }
 0xc7b   :  { %v583_v28 = vpop.permute.xlu1 %582 }
 0xc7c   :  { %v1400_v25 = vmul.f32 %v583_v28, %v565_v2 }
 0xc7d   :  { %1061 = vset.pattern.permute.xlu1 %v1139_v34  ;;  %1062 = vset.pattern.permute.xlu0 %v1138_v33 }
 0xc7e   :  { %637 = vperm.xlu1 %1061, %v1400_v25   ;;  %646 = vperm.xlu0 %1062, %v1400_v25  }
 0xc82   :  { %1064 = vset.pattern.permute.xlu1 %v1138_v33  ;;  %1063 = vset.pattern.permute.xlu0 %v1139_v34 }
 0xcf8   :  { %v631_v29 = vpop.permute.xlu1 %630  ;;  %v625_v31 = vpop.permute.xlu0 %624 }
 0xcf9   :  { %v685_v32 = vmul.f32 %v631_v29, %v1175_v11  ;;  %v627_v35 = vmul.f32 %v625_v31, %v1207_v40  ;;  %v680_v36 = vmul.f32 %v625_v31, %v1173_v10  ;;  %v633_v48 = vmul.f32 %v631_v29, %v1209_v41 }
 0xcfb   :  { %v682_v37 = vrot.slane %v680_v36, 6  ;;  %v628_v38 = vadd.f32 %v1216_v44, %v627_v35  ;;  %v687_v39 = vrot.slane %v685_v32, 6 }
 0xcfd   :  { %v684_v43 = vadd.f32 %v682_v37, %v1181_v15  ;;  %v638_v45 = vpop.permute.xlu1 %637  ;;  %v647_v47 = vpop.permute.xlu0 %646  ;;  %v634_v52 = vadd.f32 %v633_v48, %v628_v38 }
 0xcfe   :  { %v640_v49 = vmul.f32 %v638_v45, %v1211_v42  ;;  %v649_v50 = vmul.f32 %v647_v47, %v1218_v46 }
 0xcff   :  { %v689_v51 = vadd.f32 %v687_v39, %v684_v43 }
 0xd00   :  { %v642_v53 = vrot.slane %v640_v49, 6  ;;  %v651_v56 = vrot.slane %v649_v50, 6 }
 0xd01   :  { %v690_v54 = vmul.f32 0.5, %v689_v51 }
 0xd02   :  { %v644_v55 = vadd.f32 %v642_v53, %v634_v52 }
 0xd03   :  { %v691_v57 = vsel %vm112_vm4, %v690_v54, %v689_v51 }
 0xd04   :  { %1115 = vtanh.f32 %v691_v57  ;;  %v653_v58 = vadd.f32 %v651_v56, %v644_v55 }
 0xd06   :  { %v654_v17 = vmul.f32 0.5, %v653_v58 }
 0xd08   :  { %v655_v59 = vsel %vm112_vm4, %v654_v17, %v653_v58 }
 0xd09   :  { %1117 = vtanh.f32 %v655_v59 }
 0xd0e   :  { %v1116_v60 = vpop.eup %1115 }
 0xd0f   :  { %v693_v61 = vmul.f32 0.5, %v1116_v60 }
 0xd11   :  { %v694_v62 = vadd.f32 0.5, %v693_v61 }
 0xd13   :  { %v1118_v63 = vpop.eup %1117  ;;  %v695_v0 = vsel %vm112_vm4, %v694_v62, %v1116_v60 }
 0xd14   :  { %701 = vrot.lane.b32.xlu1 %v695_v0, %s1136_s0  ;;  %v657_v1 = vmul.f32 0.5, %v1118_v63  ;;  %v699_v9 = vmul.f32 %v697_v8, %v695_v0 }
 0xd16   :  { %v658_v2 = vadd.f32 0.5, %v657_v1 }
 0xd18   :  { %v659_v3 = vsel %vm112_vm4, %v658_v2, %v1118_v63 }
 0xd19   :  { %665 = vrot.lane.b32.xlu1 %v659_v3, %s1136_s0  ;;  %v663_v13 = vmul.f32 %v661_v26, %v659_v3 }
 0xd86   :  { %v702_v4 = vpop.permute.xlu1 %701 }
 0xd87   :  { %v704_v5 = vmul.f32 %v702_v4, %v695_v0 }
 0xd89   :  { %706 = vrot.lane.b32.xlu0 %v704_v5, %s1137_s21 }
 0xd8b   :  { %v666_v6 = vpop.permute.xlu1 %665 }
 0xd8c   :  { %v668_v7 = vmul.f32 %v666_v6, %v659_v3 }
 0xd8e   :  { %670 = vrot.lane.b32.xlu1 %v668_v7, %s1137_s21 }
 0xdfb   :  { %v707_v18 = vpop.permute.xlu0 %706 }
 0xdfc   :  { %v1429_v20 = vadd.f32 %v707_v18, %v699_v9 }
 0xdfe   :  { %1119 = vtanh.f32 %v1429_v20  ;;  %v791_v7 = vrot.slane %v1429_v20, 6 }
 0xe00   :  { %v671_v21 = vpop.permute.xlu1 %670 }
 0xe01   :  { %v1433_v12 = vadd.f32 %v671_v21, %v663_v13 }
 0xe03   :  { %1121 = vtanh.f32 %v1433_v12  ;;  %v755_v26 = vrot.slane %v1433_v12, 6 }
 0xe08   :  { %v1120_v27 = vpop.eup %1119 }
 0xe09   :  { %712 = vrot.lane.b32.xlu0 %v1120_v27, %s1137_s21 }
 0xe0d   :  { %v1122_v28 = vpop.eup %1121 }
 0xe0e   :  { %676 = vrot.lane.b32.xlu1 %v1122_v28, %s1137_s21 }
 0xe7b   :  { %v713_v14 = vpop.permute.xlu0 %712 }
 0xe7c   :  { %v715_v29 = vmul.f32 %v713_v14, %v695_v0 }
 0xe7e   :  { %724 = vperm.xlu1 %1064, %v715_v29   ;;  %718 = vperm.xlu0 %1063, %v715_v29  }
 0xe80   :  { %v677_v31 = vpop.permute.xlu1 %676 }
 0xe81   :  { %v1438_v16 = vmul.f32 %v677_v31, %v659_v3 }
 0xe82   :  { %1065 = vset.pattern.permute.xlu1 %v1139_v34  ;;  %1066 = vset.pattern.permute.xlu0 %v1138_v33 }
 0xe83   :  { %731 = vperm.xlu1 %1065, %v1438_v16   ;;  %740 = vperm.xlu0 %1066, %v1438_v16  }
 0xe87   :  { %1068 = vset.pattern.permute.xlu1 %v1138_v33  ;;  %1067 = vset.pattern.permute.xlu0 %v1139_v34 }
 0xefd   :  { %v725_v32 = vpop.permute.xlu1 %724  ;;  %v719_v35 = vpop.permute.xlu0 %718 }
 0xefe   :  { %v779_v36 = vmul.f32 %v725_v32, %v1175_v11  ;;  %v721_v37 = vmul.f32 %v719_v35, %v1207_v40  ;;  %v774_v38 = vmul.f32 %v719_v35, %v1173_v10  ;;  %v727_v50 = vmul.f32 %v725_v32, %v1209_v41 }
 0xf00   :  { %v776_v39 = vrot.slane %v774_v38, 6  ;;  %v722_v43 = vadd.f32 %v1216_v44, %v721_v37  ;;  %v781_v45 = vrot.slane %v779_v36, 6 }
 0xf02   :  { %v778_v47 = vadd.f32 %v776_v39, %v1181_v15  ;;  %v732_v48 = vpop.permute.xlu1 %731  ;;  %v741_v49 = vpop.permute.xlu0 %740  ;;  %v728_v11 = vadd.f32 %v727_v50, %v722_v43 }
 0xf03   :  { %v734_v51 = vmul.f32 %v732_v48, %v1211_v42  ;;  %v743_v52 = vmul.f32 %v741_v49, %v1218_v46 }
 0xf04   :  { %v783_v53 = vadd.f32 %v781_v45, %v778_v47 }
 0xf05   :  { %v736_v54 = vrot.slane %v734_v51, 6  ;;  %v745_v10 = vrot.slane %v743_v52, 6 }
 0xf06   :  { %v784_v55 = vmul.f32 0.5, %v783_v53 }
 0xf07   :  { %v738_v56 = vadd.f32 %v736_v54, %v728_v11 }
 0xf08   :  { %v785_v57 = vsel %vm112_vm4, %v784_v55, %v783_v53 }
 0xf09   :  { %1123 = vtanh.f32 %v785_v57  ;;  %v747_v58 = vadd.f32 %v745_v10, %v738_v56  ;;  %v880_v10 = vrot.slane %v1286_v24, 1  ;;  %v888_v57 = vrot.slane %v1324_v23, 1 }
 0xf0b   :  { %v748_v15 = vmul.f32 0.5, %v747_v58 }
 0xf0d   :  { %v749_v17 = vsel %vm112_vm4, %v748_v15, %v747_v58  ;;  %v871_v58 = vrot.slane %v1248_v30, 1  ;;  %v896_v15 = vrot.slane %v1362_v22, 1 }
 0xf0e   :  { %1125 = vtanh.f32 %v749_v17  ;;  %v904_v17 = vrot.slane %v1400_v25, 1 }
 0xf13   :  { %v1124_v59 = vpop.eup %1123 }
 0xf14   :  { %v787_v60 = vmul.f32 0.5, %v1124_v59 }
 0xf16   :  { %v788_v61 = vadd.f32 0.5, %v787_v60 }
 0xf18   :  { %v1126_v62 = vpop.eup %1125  ;;  %v789_v63 = vsel %vm112_vm4, %v788_v61, %v1124_v59  ;;  %v912_v59 = vrot.slane %v1438_v16, 1 }
 0xf19   :  { %795 = vrot.lane.b32.xlu1 %v789_v63, %s1136_s0  ;;  %v751_v0 = vmul.f32 0.5, %v1126_v62  ;;  %v793_v8 = vmul.f32 %v791_v7, %v789_v63 }
 0xf1b   :  { %v752_v1 = vadd.f32 0.5, %v751_v0 }
 0xf1d   :  { %v753_v2 = vsel %vm112_vm4, %v752_v1, %v1126_v62 }
 0xf1e   :  { %759 = vrot.lane.b32.xlu1 %v753_v2, %s1136_s0  ;;  %v757_v13 = vmul.f32 %v755_v26, %v753_v2 }
 0xf8b   :  { %v796_v3 = vpop.permute.xlu1 %795 }
 0xf8c   :  { %v798_v4 = vmul.f32 %v796_v3, %v789_v63 }
 0xf8e   :  { %800 = vrot.lane.b32.xlu0 %v798_v4, %s1137_s21 }
 0xf90   :  { %v760_v5 = vpop.permute.xlu1 %759 }
 0xf91   :  { %v762_v6 = vmul.f32 %v760_v5, %v753_v2 }
 0xf93   :  { %764 = vrot.lane.b32.xlu1 %v762_v6, %s1137_s21 }
0x1000   :  { %v801_v9 = vpop.permute.xlu0 %800 }
0x1001   :  { %v1467_v18 = vadd.f32 %v801_v9, %v793_v8 }
0x1003   :  { %1127 = vtanh.f32 %v1467_v18 }
0x1005   :  { %v765_v21 = vpop.permute.xlu1 %764 }
0x1006   :  { %v767_v27 = vadd.f32 %v765_v21, %v757_v13 }
0x1008   :  { %1129 = vtanh.f32 %v767_v27  ;;  %v849_v19 = vrot.slane %v767_v27, 6 }
0x100d   :  { %v1128_v28 = vpop.eup %1127 }
0x100e   :  { %806 = vrot.lane.b32.xlu0 %v1128_v28, %s1137_s21 }
0x1012   :  { %v1130_v14 = vpop.eup %1129 }
0x1013   :  { %770 = vrot.lane.b32.xlu1 %v1130_v14, %s1137_s21 }
0x1080   :  { %v807_v29 = vpop.permute.xlu0 %806 }
0x1081   :  { %v1473_v20 = vmul.f32 %v807_v29, %v789_v63 }
0x1083   :  { %818 = vperm.xlu1 %1068, %v1473_v20   ;;  %812 = vperm.xlu0 %1067, %v1473_v20   ;;  %v937_v60 = vrot.slane %v1473_v20, 1 }
0x1085   :  { %v771_v12 = vpop.permute.xlu1 %770 }
0x1086   :  { %v773_v31 = vmul.f32 %v771_v12, %v753_v2 }
0x1087   :  { %1069 = vset.pattern.permute.xlu1 %v1139_v34  ;;  %1070 = vset.pattern.permute.xlu0 %v1138_v33 }
0x1088   :  { %825 = vperm.xlu1 %1069, %v773_v31   ;;  %834 = vperm.xlu0 %1070, %v773_v31  }
0x1102   :  { %v819_v32 = vpop.permute.xlu1 %818  ;;  %v813_v35 = vpop.permute.xlu0 %812 }
0x1103   :  { %v815_v36 = vmul.f32 %v813_v35, %v1207_v40  ;;  %v821_v43 = vmul.f32 %v819_v32, %v1209_v41 }
0x1105   :  { %v816_v37 = vadd.f32 %v1216_v44, %v815_v36 }
0x1107   :  { %v826_v38 = vpop.permute.xlu1 %825  ;;  %v835_v39 = vpop.permute.xlu0 %834  ;;  %v822_v48 = vadd.f32 %v821_v43, %v816_v37 }
0x1108   :  { %v828_v45 = vmul.f32 %v826_v38, %v1211_v42  ;;  %v837_v47 = vmul.f32 %v835_v39, %v1218_v46 }
0x110a   :  { %v830_v34 = vrot.slane %v828_v45, 6  ;;  %v839_v33 = vrot.slane %v837_v47, 6  ;;  %v946_v47 = vrot.slane %v1467_v18, 1 }
0x110c   :  { %v832_v49 = vadd.f32 %v830_v34, %v822_v48 }
0x110e   :  { %v841_v50 = vadd.f32 %v839_v33, %v832_v49 }
0x1110   :  { %v842_v51 = vmul.f32 0.5, %v841_v50 }
0x1112   :  { %v843_v52 = vsel %vm112_vm4, %v842_v51, %v841_v50 }
0x1113   :  { %1131 = vtanh.f32 %v843_v52 }
0x111d   :  { %v1132_v40 = vpop.eup %1131 }
0x111e   :  { %v845_v44 = vmul.f32 0.5, %v1132_v40 }
0x1120   :  { %v846_v53 = vadd.f32 0.5, %v845_v44 }
0x1122   :  { %v847_v41 = vsel %vm112_vm4, %v846_v53, %v1132_v40 }
0x1123   :  { %853 = vrot.lane.b32.xlu1 %v847_v41, %s1136_s0  ;;  %v851_v11 = vmul.f32 %v849_v19, %v847_v41 }
0x1195   :  { %v854_v42 = vpop.permute.xlu1 %853 }
0x1196   :  { %v856_v46 = vmul.f32 %v854_v42, %v847_v41 }
0x1198   :  { %858 = vrot.lane.b32.xlu1 %v856_v46, %s1137_s21 }
0x119c   :  { %877 = vrot.lane.b32.xlu1 %v1286_v24, %s1140_s1  ;;  %v920_v24 = vrot.slane %v773_v31, 1 }
0x11a0   :  { %885 = vrot.lane.b32.xlu1 %v1324_v23, %s1140_s1 }
0x11a4   :  { %868 = vrot.lane.b32.xlu1 %v1248_v30, %s1140_s1 }
0x11a8   :  { %893 = vrot.lane.b32.xlu1 %v1362_v22, %s1140_s1 }
0x11ac   :  { %901 = vrot.lane.b32.xlu1 %v1400_v25, %s1140_s1 }
0x11b0   :  { %909 = vrot.lane.b32.xlu1 %v1438_v16, %s1140_s1 }
0x11b4   :  { %934 = vrot.lane.b32.xlu1 %v1473_v20, %s1140_s1 }
0x11b8   :  { %917 = vrot.lane.b32.xlu1 %v773_v31, %s1140_s1 }
0x120a   :  { %v859_v54 = vpop.permute.xlu1 %858 }
0x120b   :  { %v1505_v55 = vadd.f32 %v859_v54, %v851_v11 }
0x120d   :  { %1133 = vtanh.f32 %v1505_v55  ;;  %v953_v53 = vrot.slane %v1505_v55, 1 }
0x120e   :  { %v878_v22 = vpop.permute.xlu1 %877 }
0x1212   :  { %v886_v16 = vpop.permute.xlu1 %885 }
0x1216   :  { %v869_v0 = vpop.permute.xlu1 %868 }
0x1217   :  { %v1134_v56 = vpop.eup %1133 }
0x1218   :  { %864 = vrot.lane.b32.xlu0 %v1134_v56, %s1137_s21 }
0x121a   :  { %v894_v2 = vpop.permute.xlu1 %893 }
0x121c   :  { %881 = vrot.lane.b32.xlu0 %v880_v10, %s1141_s28 }
0x121e   :  { %v902_v4 = vpop.permute.xlu1 %901 }
0x1220   :  { %889 = vrot.lane.b32.xlu0 %v888_v57, %s1141_s28 }
0x1222   :  { %v910_v6 = vpop.permute.xlu1 %909 }
0x1224   :  { %872 = vrot.lane.b32.xlu0 %v871_v58, %s1141_s28 }
0x1226   :  { %v935_v8 = vpop.permute.xlu1 %934 }
0x1228   :  { %897 = vrot.lane.b32.xlu0 %v896_v15, %s1141_s28 }
0x122a   :  { %v918_v27 = vpop.permute.xlu1 %917 }
0x122c   :  { %905 = vrot.lane.b32.xlu0 %v904_v17, %s1141_s28 }
0x1230   :  { %913 = vrot.lane.b32.xlu0 %v912_v59, %s1141_s28 }
0x1234   :  { %938 = vrot.lane.b32.xlu0 %v937_v60, %s1141_s28 }
0x1238   :  { %921 = vrot.lane.b32.xlu0 %v920_v24, %s1141_s28 }
0x128a   :  { %v865_v61 = vpop.permute.xlu0 %864 }
0x128b   :  { %v867_v23 = vmul.f32 %v865_v61, %v847_v41 }
0x128d   :  { %v929_v62 = vrot.slane %v867_v23, 1  ;;  %926 = vrot.lane.b32.xlu1 %v867_v23, %s1140_s1 }
0x128e   :  { %v882_v30 = vpop.permute.xlu0 %881 }
0x128f   :  { %930 = vrot.lane.b32.xlu0 %v929_v62, %s1141_s28  ;;  %v884_v9 = vsel %vm875_vm5, %v878_v22, %v882_v30 }
0x1290   :  { %v957_v28 = vrot.slane %v884_v9, 1 }
0x1291   :  { %943 = vrot.lane.b32.xlu1 %v1467_v18, %s1141_s28 }
0x1292   :  { %v890_v25 = vpop.permute.xlu0 %889 }
0x1293   :  { %950 = vrot.lane.b32.xlu0 %v1505_v55, %s1141_s28  ;;  %v892_v14 = vsel %vm875_vm5, %v886_v16, %v890_v25 }
0x1294   :  { %v960_v35 = vrot.slane %v892_v14, 2 }
0x1296   :  { %v873_v63 = vpop.permute.xlu0 %872 }
0x1297   :  { %v876_v26 = vsel %vm875_vm5, %v869_v0, %v873_v63 }
0x1298   :  { %v989_v12 = vsel %vm988_vm6, %v876_v26, %v957_v28 }
0x1299   :  { %v990_v39 = vsel %vm31_vm0, %v989_v12, %v960_v35 }
0x129a   :  { %v898_v1 = vpop.permute.xlu0 %897 }
0x129b   :  { %v900_v13 = vsel %vm875_vm5, %v894_v2, %v898_v1 }
0x129c   :  { %v963_v31 = vrot.slane %v900_v13, 3 }
0x129e   :  { %v906_v3 = vpop.permute.xlu0 %905  ;;  %v992_v48 = vsel %vm991_vm7, %v990_v39, %v963_v31 }
0x129f   :  { %v908_v29 = vsel %vm875_vm5, %v902_v4, %v906_v3 }
0x12a0   :  { %v966_v36 = vrot.slane %v908_v29, 4 }
0x12a2   :  { %v914_v5 = vpop.permute.xlu0 %913  ;;  %v994_v49 = vsel %vm993_vm8, %v992_v48, %v966_v36 }
0x12a3   :  { %v916_v20 = vsel %vm875_vm5, %v910_v6, %v914_v5 }
0x12a4   :  { %v969_v37 = vrot.slane %v916_v20, 5 }
0x12a6   :  { %v939_v7 = vpop.permute.xlu0 %938  ;;  %v996_v50 = vsel %vm995_vm9, %v994_v49, %v969_v37 }
0x12a7   :  { %v941_v43 = vsel %vm875_vm5, %v935_v8, %v939_v7 }
0x12a8   :  { %v978_v51 = vrot.slane %v941_v43, 6 }
0x12aa   :  { %v922_v21 = vpop.permute.xlu0 %921 }
0x12ab   :  { %v924_v32 = vsel %vm875_vm5, %v918_v27, %v922_v21 }
0x12ac   :  { %v972_v45 = vrot.slane %v924_v32, 6 }
0x12ae   :  { %v998_v41 = vsel %vm997_vm10, %v996_v50, %v972_v45 }
0x12ff   :  { %v927_v38 = vpop.permute.xlu1 %926 }
0x1301   :  { %v931_v34 = vpop.permute.xlu0 %930 }
0x1302   :  { %v933_v33 = vsel %vm875_vm5, %v927_v38, %v931_v34 }
0x1303   :  { %v975_v52 = vrot.slane %v933_v33, 7  ;;  %v980_v40 = vrot.slane %v933_v33, 5  ;;  %v944_v44 = vpop.permute.xlu1 %943 }
0x1304   :  { %v948_v42 = vsel %vm875_vm5, %v944_v44, %v946_v47 }
0x1305   :  { %v1000_v18 = vsel %vm999_vm11, %v998_v41, %v975_v52  ;;  %v1001_v46 = vsel %vm988_vm6, %v978_v51, %v980_v40  ;;  %v983_v19 = vrot.slane %v948_v42, 4  ;;  %v951_v11 = vpop.permute.xlu0 %950 }
0x1306   :  { %1005 = vst.msk [vmem:[%s1546_s2] sm:$0xff] %vm1004_vm12, %v1000_v18  ;;  %v955_v54 = vsel %vm875_vm5, %v951_v11, %v953_v53 }
0x1307   :  { %v1002_v56 = vsel %vm31_vm0, %v1001_v46, %v983_v19  ;;  %v986_v10 = vrot.slane %v955_v54, 3 }
0x1309   :  { %v1003_v55 = vsel %vm991_vm7, %v1002_v56, %v986_v10 }
0x130a   :  { %1007 = vst.msk [vmem:[%s1546_s2 + $0x8] sm:$0xf] %vm1006_vm13, %v1003_v55 }

</bundles_post_ra>
